<compile_context>
chip_gen: v6e
topology: v6e:2x2x1
jax: 0.10.0
libtpu: 0.0.40
codegen_flags: <defaults>
</compile_context>

<pallas_src>
import jax
import jax.numpy as jnp
from jax.experimental import pallas as pl
from jax.experimental.pallas import tpu as pltpu

# ----------------------------------------------------------------------------
# Model hyper-parameters (small, consistent with the module's forward)
# ----------------------------------------------------------------------------
BATCH = 16                                  # >1 needed for BN batch stats; 16 fills a bf16 sublane tile
CHANNELS = 4
IMG_SIZE = 16
IN_FEATURES = CHANNELS * IMG_SIZE * IMG_SIZE   # 1024
HIDDEN = 512
LATENT_DIM = 32
LATENT_PAD = 128                            # lane-dense padded output width

BN_EPS = 0.8                                # nn.BatchNorm1d(512, 0.8) -> eps = 0.8
LRELU_SLOPE = 0.2

# Packed per-layer vector slab layout (rows of a (16, HIDDEN) f32 array):
#   0: b1   1: g1   2: beta1   3: scale1
#   4: b2   5: g2   6: beta2   7: scale2
#   8: b3 (first LATENT_PAD cols)   9: scale3 (first LATENT_PAD cols)
#   10..15: zero padding (sublane-tile alignment)
VEC_ROWS = 16


# ----------------------------------------------------------------------------
# Fused Pallas kernel: 3 matmuls + 2 LeakyReLU + 2 BatchNorm (batch statistics)
# ----------------------------------------------------------------------------
def encoder_kernel(x_ref, w1_ref, w2_ref, w3_ref, vec_ref, out_ref):
    x = x_ref[...]                                   # (B, IN) f32
    vec = vec_ref[...]                               # (16, HIDDEN) f32

    b1, g1, be1, s1 = vec[0:1], vec[1:2], vec[2:3], vec[3:4]
    b2, g2, be2, s2 = vec[4:5], vec[5:6], vec[6:7], vec[7:8]
    b3 = vec[8:9, :LATENT_PAD]
    s3 = vec[9:10, :LATENT_PAD]

    def leaky_relu(h):
        return jnp.where(h > 0, h, LRELU_SLOPE * h)

    def batch_norm(h, g, beta):
        mean = jnp.mean(h, axis=0, keepdims=True)
        var = jnp.mean(jnp.square(h - mean), axis=0, keepdims=True)   # biased
        return (h - mean) * jax.lax.rsqrt(var + BN_EPS) * g + beta

    def qdot(a, wq_ref, scale):
        # int8 weights are cast to bf16 in-register (exact: |q| <= 127),
        # MXU accumulates in f32, per-output-channel scale applied to the
        # (B, N) result only.
        acc = jnp.dot(a.astype(jnp.bfloat16),
                      wq_ref[...].astype(jnp.bfloat16),
                      preferred_element_type=jnp.float32)
        return acc * scale

    # ---- Linear 1 + LeakyReLU + BatchNorm1d --------------------------------
    h = qdot(x, w1_ref, s1) + b1
    h = batch_norm(leaky_relu(h), g1, be1)

    # ---- Linear 2 + LeakyReLU + BatchNorm1d --------------------------------
    h = qdot(h, w2_ref, s2) + b2
    h = batch_norm(leaky_relu(h), g2, be2)

    # ---- Linear 3 (projection to padded latent space) ----------------------
    z = qdot(h, w3_ref, s3) + b3
    out_ref[...] = z.astype(out_ref.dtype)


def encoder_forward(img, params):
    """img: (B, C, H, W) float32  ->  z: (B, LATENT_DIM) float32."""
    B = img.shape[0]
    x = img.reshape(B, -1)                  # NCHW row-major flatten == torch .view

    (w1q, w2q, w3q, vec) = params

    vmem_spec = pl.BlockSpec(memory_space=pltpu.MemorySpace.VMEM)

    weight_bytes = (IN_FEATURES * HIDDEN + HIDDEN * HIDDEN + HIDDEN * LATENT_PAD)  # int8
    bytes_accessed = (weight_bytes
                      + VEC_ROWS * HIDDEN * 4
                      + B * IN_FEATURES * 4
                      + B * LATENT_PAD * 4)
    flops = 2 * B * (IN_FEATURES * HIDDEN + HIDDEN * HIDDEN + HIDDEN * LATENT_PAD)

    out = pl.pallas_call(
        encoder_kernel,
        out_shape=jax.ShapeDtypeStruct((B, LATENT_PAD), jnp.float32),
        in_specs=[vmem_spec] * 5,           # one spec per input: x, w1, w2, w3, vec
        out_specs=vmem_spec,
        compiler_params=pltpu.CompilerParams(vmem_limit_bytes=16 << 20),
        cost_estimate=pl.CostEstimate(flops=flops, transcendentals=2 * HIDDEN,
                                      bytes_accessed=bytes_accessed),
    )(x, w1q, w2q, w3q, vec)
    return out[:, :LATENT_DIM]


# ----------------------------------------------------------------------------
# Deterministic parameter initialization (PyTorch-Linear-like uniform ranges).
# Weights quantized to int8 (per-output-channel symmetric); bias / BN-gamma /
# BN-beta / dequant scales packed into a single (16, HIDDEN) f32 slab.
# ----------------------------------------------------------------------------
def quantize_per_channel(w):
    amax = jnp.max(jnp.abs(w), axis=0)                      # (out,)
    scale = jnp.where(amax > 0, amax / 127.0, 1.0)
    wq = jnp.clip(jnp.round(w / scale), -127, 127).astype(jnp.int8)
    return wq, scale.astype(jnp.float32)


def init_params(key):
    def linear(key, fan_in, fan_out):
        k_w, k_b = jax.random.split(key)
        bound = 1.0 / jnp.sqrt(fan_in)
        w = jax.random.uniform(k_w, (fan_in, fan_out), jnp.float32, -bound, bound)
        b = jax.random.uniform(k_b, (fan_out,), jnp.float32, -bound, bound)
        return w, b

    k1, k2, k3 = jax.random.split(key, 3)
    w1, b1 = linear(k1, IN_FEATURES, HIDDEN)
    w2, b2 = linear(k2, HIDDEN, HIDDEN)
    w3, b3 = linear(k3, HIDDEN, LATENT_DIM)

    # BatchNorm affine params (PyTorch default: gamma=1, beta=0)
    g1 = jnp.ones((HIDDEN,), jnp.float32)
    beta1 = jnp.zeros((HIDDEN,), jnp.float32)
    g2 = jnp.ones((HIDDEN,), jnp.float32)
    beta2 = jnp.zeros((HIDDEN,), jnp.float32)

    # Pad the final projection to a lane-dense 128-wide output.
    w3p = jnp.zeros((HIDDEN, LATENT_PAD), jnp.float32).at[:, :LATENT_DIM].set(w3)
    b3p = jnp.zeros((LATENT_PAD,), jnp.float32).at[:LATENT_DIM].set(b3)

    w1q, s1 = quantize_per_channel(w1)
    w2q, s2 = quantize_per_channel(w2)
    w3q, s3 = quantize_per_channel(w3p)

    vec = jnp.zeros((VEC_ROWS, HIDDEN), jnp.float32)
    vec = vec.at[0].set(b1).at[1].set(g1).at[2].set(beta1).at[3].set(s1)
    vec = vec.at[4].set(b2).at[5].set(g2).at[6].set(beta2).at[7].set(s2)
    vec = vec.at[8, :LATENT_PAD].set(b3p).at[9, :LATENT_PAD].set(s3)

    return (w1q, w2q, w3q, vec)


# ----------------------------------------------------------------------------
# Pure-JAX reference (mirrors the kernel's int8-weight / bf16-MXU / f32 math)
# ----------------------------------------------------------------------------
def encoder_reference(img, params):
    (w1q, w2q, w3q, vec) = params
    x = img.reshape(img.shape[0], -1)

    def qdot(a, wq, scale):
        acc = jnp.dot(a.astype(jnp.bfloat16), wq.astype(jnp.bfloat16),
                      preferred_element_type=jnp.float32)
        return acc * scale

    def bn(h, g, beta):
        mean = jnp.mean(h, axis=0, keepdims=True)
        var = jnp.mean(jnp.square(h - mean), axis=0, keepdims=True)
        return (h - mean) * jax.lax.rsqrt(var + BN_EPS) * g + beta

    def lrelu(h):
        return jnp.where(h > 0, h, LRELU_SLOPE * h)

    h = qdot(x, w1q, vec[3:4]) + vec[0:1]
    h = bn(lrelu(h), vec[1:2], vec[2:3])

    h = qdot(h, w2q, vec[7:8]) + vec[4:5]
    h = bn(lrelu(h), vec[5:6], vec[6:7])

    z = qdot(h, w3q, vec[9:10, :LATENT_PAD]) + vec[8:9, :LATENT_PAD]
    return z[:, :LATENT_DIM]


if __name__ == "__main__":
    key = jax.random.PRNGKey(0)
    k_params, k_img = jax.random.split(key)

    params = init_params(k_params)
    img = jax.random.normal(k_img, (BATCH, CHANNELS, IMG_SIZE, IMG_SIZE),
                            dtype=jnp.float32)

    z = encoder_forward(img, params)
    z = jax.block_until_ready(z)

    z_ref = encoder_reference(img, params)
    assert z.shape == (BATCH, LATENT_DIM)
    assert jnp.allclose(z, z_ref, atol=2e-2, rtol=2e-2), "mismatch vs reference"

    print("KERNEL_OK")
</pallas_src>

<mosaic_0001>
module attributes {stable_mosaic.version = 11 : i64} {
  func.func @encoder_kernel(%arg0: memref<16x1024xf32, #tpu.memory_space<vmem>>, %arg1: memref<1024x512xi8, #tpu.memory_space<vmem>>, %arg2: memref<512x512xi8, #tpu.memory_space<vmem>>, %arg3: memref<512x128xi8, #tpu.memory_space<vmem>>, %arg4: memref<16x512xf32, #tpu.memory_space<vmem>>, %arg5: memref<16x128xf32, #tpu.memory_space<vmem>>) attributes {dimension_semantics = [], scalar_prefetch = 0 : i64, scratch_operands = 0 : i64, tpu.core_type = #tpu.core_type<tc>} {
    %c0 = arith.constant 0 : index
    %c0_0 = arith.constant 0 : index
    %0 = vector.load %arg0[%c0, %c0_0] : memref<16x1024xf32, #tpu.memory_space<vmem>>, vector<16x1024xf32>
    %c0_1 = arith.constant 0 : index
    %c0_2 = arith.constant 0 : index
    %1 = vector.load %arg4[%c0_1, %c0_2] : memref<16x512xf32, #tpu.memory_space<vmem>>, vector<16x512xf32>
    %2 = vector.extract_strided_slice %1 {offsets = [0, 0], sizes = [1, 512], strides = [1, 1]} : vector<16x512xf32> to vector<1x512xf32>
    %3 = vector.extract_strided_slice %1 {offsets = [1, 0], sizes = [1, 512], strides = [1, 1]} : vector<16x512xf32> to vector<1x512xf32>
    %4 = vector.extract_strided_slice %1 {offsets = [2, 0], sizes = [1, 512], strides = [1, 1]} : vector<16x512xf32> to vector<1x512xf32>
    %5 = vector.extract_strided_slice %1 {offsets = [3, 0], sizes = [1, 512], strides = [1, 1]} : vector<16x512xf32> to vector<1x512xf32>
    %6 = vector.extract_strided_slice %1 {offsets = [4, 0], sizes = [1, 512], strides = [1, 1]} : vector<16x512xf32> to vector<1x512xf32>
    %7 = vector.extract_strided_slice %1 {offsets = [5, 0], sizes = [1, 512], strides = [1, 1]} : vector<16x512xf32> to vector<1x512xf32>
    %8 = vector.extract_strided_slice %1 {offsets = [6, 0], sizes = [1, 512], strides = [1, 1]} : vector<16x512xf32> to vector<1x512xf32>
    %9 = vector.extract_strided_slice %1 {offsets = [7, 0], sizes = [1, 512], strides = [1, 1]} : vector<16x512xf32> to vector<1x512xf32>
    %10 = vector.extract_strided_slice %1 {offsets = [8, 0], sizes = [1, 128], strides = [1, 1]} : vector<16x512xf32> to vector<1x128xf32>
    %11 = vector.extract_strided_slice %1 {offsets = [9, 0], sizes = [1, 128], strides = [1, 1]} : vector<16x512xf32> to vector<1x128xf32>
    %12 = arith.truncf %0 : vector<16x1024xf32> to vector<16x1024xbf16>
    %c0_3 = arith.constant 0 : index
    %c0_4 = arith.constant 0 : index
    %13 = vector.load %arg1[%c0_3, %c0_4] : memref<1024x512xi8, #tpu.memory_space<vmem>>, vector<1024x512xi8>
    %14 = arith.sitofp %13 : vector<1024x512xi8> to vector<1024x512xbf16>
    %cst = arith.constant dense<0.000000e+00> : vector<16x512xf32>
    %15 = tpu.matmul %12, %14, %cst {dimension_numbers = #tpu.dot_dimension_numbers<[1], [0], [0], [1], [0, 0, 1, 1], [], []>} : vector<16x1024xbf16>, vector<1024x512xbf16>, vector<16x512xf32> -> vector<16x512xf32>
    %16 = vector.broadcast %5 : vector<1x512xf32> to vector<16x512xf32>
    %17 = arith.mulf %15, %16 : vector<16x512xf32>
    %18 = vector.broadcast %2 : vector<1x512xf32> to vector<16x512xf32>
    %19 = arith.addf %17, %18 : vector<16x512xf32>
    %cst_5 = arith.constant 0.000000e+00 : f32
    %20 = vector.broadcast %cst_5 : f32 to vector<16x512xf32>
    %21 = arith.cmpf ogt, %19, %20 : vector<16x512xf32>
    %cst_6 = arith.constant 2.000000e-01 : f32
    %22 = vector.broadcast %cst_6 : f32 to vector<16x512xf32>
    %23 = arith.mulf %22, %19 : vector<16x512xf32>
    %24 = arith.select %21, %19, %23 : vector<16x512xi1>, vector<16x512xf32>
    %cst_7 = arith.constant dense<0.000000e+00> : vector<512xf32>
    %25 = vector.multi_reduction <add>, %24, %cst_7 [0] : vector<16x512xf32> to vector<512xf32>
    %26 = vector.shape_cast %25 : vector<512xf32> to vector<1x512xf32>
    %cst_8 = arith.constant 1.600000e+01 : f32
    %27 = vector.broadcast %cst_8 : f32 to vector<1x512xf32>
    %28 = arith.divf %26, %27 : vector<1x512xf32>
    %29 = vector.broadcast %28 : vector<1x512xf32> to vector<16x512xf32>
    %30 = arith.subf %24, %29 : vector<16x512xf32>
    %31 = arith.mulf %30, %30 : vector<16x512xf32>
    %cst_9 = arith.constant dense<0.000000e+00> : vector<512xf32>
    %32 = vector.multi_reduction <add>, %31, %cst_9 [0] : vector<16x512xf32> to vector<512xf32>
    %33 = vector.shape_cast %32 : vector<512xf32> to vector<1x512xf32>
    %cst_10 = arith.constant 1.600000e+01 : f32
    %34 = vector.broadcast %cst_10 : f32 to vector<1x512xf32>
    %35 = arith.divf %33, %34 : vector<1x512xf32>
    %36 = vector.broadcast %28 : vector<1x512xf32> to vector<16x512xf32>
    %37 = arith.subf %24, %36 : vector<16x512xf32>
    %cst_11 = arith.constant 8.000000e-01 : f32
    %38 = vector.broadcast %cst_11 : f32 to vector<1x512xf32>
    %39 = arith.addf %35, %38 : vector<1x512xf32>
    %40 = math.rsqrt %39 : vector<1x512xf32>
    %41 = vector.broadcast %40 : vector<1x512xf32> to vector<16x512xf32>
    %42 = arith.mulf %37, %41 : vector<16x512xf32>
    %43 = vector.broadcast %3 : vector<1x512xf32> to vector<16x512xf32>
    %44 = arith.mulf %42, %43 : vector<16x512xf32>
    %45 = vector.broadcast %4 : vector<1x512xf32> to vector<16x512xf32>
    %46 = arith.addf %44, %45 : vector<16x512xf32>
    %47 = arith.truncf %46 : vector<16x512xf32> to vector<16x512xbf16>
    %c0_12 = arith.constant 0 : index
    %c0_13 = arith.constant 0 : index
    %48 = vector.load %arg2[%c0_12, %c0_13] : memref<512x512xi8, #tpu.memory_space<vmem>>, vector<512x512xi8>
    %49 = arith.sitofp %48 : vector<512x512xi8> to vector<512x512xbf16>
    %cst_14 = arith.constant dense<0.000000e+00> : vector<16x512xf32>
    %50 = tpu.matmul %47, %49, %cst_14 {dimension_numbers = #tpu.dot_dimension_numbers<[1], [0], [0], [1], [0, 0, 1, 1], [], []>} : vector<16x512xbf16>, vector<512x512xbf16>, vector<16x512xf32> -> vector<16x512xf32>
    %51 = vector.broadcast %9 : vector<1x512xf32> to vector<16x512xf32>
    %52 = arith.mulf %50, %51 : vector<16x512xf32>
    %53 = vector.broadcast %6 : vector<1x512xf32> to vector<16x512xf32>
    %54 = arith.addf %52, %53 : vector<16x512xf32>
    %cst_15 = arith.constant 0.000000e+00 : f32
    %55 = vector.broadcast %cst_15 : f32 to vector<16x512xf32>
    %56 = arith.cmpf ogt, %54, %55 : vector<16x512xf32>
    %cst_16 = arith.constant 2.000000e-01 : f32
    %57 = vector.broadcast %cst_16 : f32 to vector<16x512xf32>
    %58 = arith.mulf %57, %54 : vector<16x512xf32>
    %59 = arith.select %56, %54, %58 : vector<16x512xi1>, vector<16x512xf32>
    %cst_17 = arith.constant dense<0.000000e+00> : vector<512xf32>
    %60 = vector.multi_reduction <add>, %59, %cst_17 [0] : vector<16x512xf32> to vector<512xf32>
    %61 = vector.shape_cast %60 : vector<512xf32> to vector<1x512xf32>
    %cst_18 = arith.constant 1.600000e+01 : f32
    %62 = vector.broadcast %cst_18 : f32 to vector<1x512xf32>
    %63 = arith.divf %61, %62 : vector<1x512xf32>
    %64 = vector.broadcast %63 : vector<1x512xf32> to vector<16x512xf32>
    %65 = arith.subf %59, %64 : vector<16x512xf32>
    %66 = arith.mulf %65, %65 : vector<16x512xf32>
    %cst_19 = arith.constant dense<0.000000e+00> : vector<512xf32>
    %67 = vector.multi_reduction <add>, %66, %cst_19 [0] : vector<16x512xf32> to vector<512xf32>
    %68 = vector.shape_cast %67 : vector<512xf32> to vector<1x512xf32>
    %cst_20 = arith.constant 1.600000e+01 : f32
    %69 = vector.broadcast %cst_20 : f32 to vector<1x512xf32>
    %70 = arith.divf %68, %69 : vector<1x512xf32>
    %71 = vector.broadcast %63 : vector<1x512xf32> to vector<16x512xf32>
    %72 = arith.subf %59, %71 : vector<16x512xf32>
    %cst_21 = arith.constant 8.000000e-01 : f32
    %73 = vector.broadcast %cst_21 : f32 to vector<1x512xf32>
    %74 = arith.addf %70, %73 : vector<1x512xf32>
    %75 = math.rsqrt %74 : vector<1x512xf32>
    %76 = vector.broadcast %75 : vector<1x512xf32> to vector<16x512xf32>
    %77 = arith.mulf %72, %76 : vector<16x512xf32>
    %78 = vector.broadcast %7 : vector<1x512xf32> to vector<16x512xf32>
    %79 = arith.mulf %77, %78 : vector<16x512xf32>
    %80 = vector.broadcast %8 : vector<1x512xf32> to vector<16x512xf32>
    %81 = arith.addf %79, %80 : vector<16x512xf32>
    %82 = arith.truncf %81 : vector<16x512xf32> to vector<16x512xbf16>
    %c0_22 = arith.constant 0 : index
    %c0_23 = arith.constant 0 : index
    %83 = vector.load %arg3[%c0_22, %c0_23] : memref<512x128xi8, #tpu.memory_space<vmem>>, vector<512x128xi8>
    %84 = arith.sitofp %83 : vector<512x128xi8> to vector<512x128xbf16>
    %cst_24 = arith.constant dense<0.000000e+00> : vector<16x128xf32>
    %85 = tpu.matmul %82, %84, %cst_24 {dimension_numbers = #tpu.dot_dimension_numbers<[1], [0], [0], [1], [0, 0, 1, 1], [], []>} : vector<16x512xbf16>, vector<512x128xbf16>, vector<16x128xf32> -> vector<16x128xf32>
    %86 = vector.broadcast %11 : vector<1x128xf32> to vector<16x128xf32>
    %87 = arith.mulf %85, %86 : vector<16x128xf32>
    %88 = vector.broadcast %10 : vector<1x128xf32> to vector<16x128xf32>
    %89 = arith.addf %87, %88 : vector<16x128xf32>
    %c0_25 = arith.constant 0 : index
    %c0_26 = arith.constant 0 : index
    %90 = vector.load %arg5[%c0_25, %c0_26] : memref<16x128xf32, #tpu.memory_space<vmem>>, vector<16x128xf32>
    tpu.vector_store %arg5[%c0_25, %c0_26], %89 {strides = array<i32>} : memref<16x128xf32, #tpu.memory_space<vmem>>, vector<16x128xf32>,
    return
  }
}

</mosaic_0001>

<bundles_post_ra>
// kernel: tpu_custom_call.1
= control target key start
LH: loop header
LB: loop body
LE: loop exit
PB: predicated region body
PF: predicated region fallthrough
CT: control target
= control target key end

     0   :  { %10 = vsyncpa [#allocation3], 0  ;;  %s2264_s0 = inlined_call_operand.hbm [shape: f32[16,1024], index: 0, kind: input, shape index: {}]   ;;  %s2265_s1 = inlined_call_operand.hbm [shape: s8[1024,512], index: 1, kind: input, shape index: {}]   ;;  %s2266_s2 = inlined_call_operand.hbm [shape: s8[512,512], index: 2, kind: input, shape index: {}]   ;;  %s2267_s3 = inlined_call_operand.hbm [shape: s8[512,128], index: 3, kind: input, shape index: {}]   ;;  %s2268_s4 = inlined_call_operand.hbm [shape: f32[16,512], index: 4, kind: input, shape index: {}]   ;;  %s2269_s5 = inlined_call_operand.hbm [shape: f32[16,128], index: 5, kind: output, shape index: {}]  }
   0x1   :  { %11 = vsyncpa [#allocation6], 0 }
   0x2   :  { %12 = vsyncpa [#allocation9], 0 }
   0x3   :  { %13 = vsyncpa [#allocation4], 0  ;;  %s2017_s18 = smov [#allocation5]  }
   0x4   :  { %s31_s19 = sshll.u32 %s2017_s18, 4  ;;  %s32_s19 = int_to_ptr.vmem [resolvable:$true] %s31_s19 }
   0x5   :  { %s1897_s20 = scalar_lea.vmem %s32_s19, 16384  ;;  %p1902_p1 = scmp.lt.s32.totalorder %s32_s19, %s32_s19 }
   0x6   :  { %p1898_p0 = scmp.ne.s32.totalorder %s32_s19, %s1897_s20  ;;  %p1903_p2 = scmp.lt.s32.totalorder %s1897_s20, %s1897_s20 }
   0x8   :  { %p1904_p3 = por %p1903_p2, %p1902_p1 }
   0xa   :  { %p1905_p4 = pnand %p1904_p3, %p1898_p0 }
   0xc   :  { %1908 = shalt.err (!%p1905_p4)
}
   0xd   :  { %s2018_s21 = smov 512   ;;  %s2019_s22 = smov 32  }
   0xe   :  { %37 = dma.hbm_to_vmem [thread:$0]  %s2265_s1, 16384, %s32_s19, [#allocation6], %s2018_s21, %s2018_s21, %s2019_s22  }
   0xf   :  { %s2020_s25 = smov [#allocation8]  }
  0x10   :  { %s55_s26 = sshll.u32 %s2020_s25, 4  ;;  %s56_s26 = int_to_ptr.vmem [resolvable:$true] %s55_s26 }
  0x11   :  { %s1917_s27 = scalar_lea.vmem %s56_s26, 2048  ;;  %p1922_p6 = scmp.lt.s32.totalorder %s56_s26, %s56_s26 }
  0x12   :  { %p1918_p5 = scmp.ne.s32.totalorder %s56_s26, %s1917_s27  ;;  %p1923_p7 = scmp.lt.s32.totalorder %s1917_s27, %s1917_s27 }
  0x14   :  { %p1924_p8 = por %p1923_p7, %p1922_p6 }
  0x16   :  { %p1925_p9 = pnand %p1924_p8, %p1918_p5 }
  0x18   :  { %1928 = shalt.err (!%p1925_p9)
}
  0x19   :  { %s2021_s28 = smov 128   ;;  %s2022_s29 = smov 8  }
  0x1a   :  { %61 = dma.hbm_to_vmem [thread:$0]  %s2267_s3, 2048, %s56_s26, [#allocation9], %s2021_s28, %s2021_s28, %s2022_s29  }
  0x1b   :  { %s2023_s1 = smov [#allocation2]  }
  0x1c   :  { %s19_s7 = sshll.u32 %s2023_s1, 4  ;;  %s20_s7 = int_to_ptr.vmem [resolvable:$true] %s19_s7 }
  0x1d   :  { %s1937_s8 = scalar_lea.vmem %s20_s7, 2048  ;;  %p1942_p11 = scmp.lt.s32.totalorder %s20_s7, %s20_s7 }
  0x1e   :  { %p1938_p10 = scmp.ne.s32.totalorder %s20_s7, %s1937_s8  ;;  %p1943_p12 = scmp.lt.s32.totalorder %s1937_s8, %s1937_s8 }
  0x20   :  { %p1944_p13 = por %p1943_p12, %p1942_p11 }
  0x22   :  { %p1945_p0 = pnand %p1944_p13, %p1938_p10 }
  0x24   :  { %1948 = shalt.err (!%p1945_p0)
}
  0x25   :  { %s2024_s9 = smov 1024   ;;  %s2025_s10 = smov 64  }
  0x26   :  { %25 = dma.hbm_to_vmem [thread:$0]  %s2264_s0, 2048, %s20_s7, [#allocation3], %s2024_s9, %s2024_s9, %s2025_s10  }
  0x27   :  { %s2026_s13 = smov [#allocation7]   ;;  %s2027_s3 = smov [#allocation10]  }
  0x28   :  { %s43_s14 = sshll.u32 %s2026_s13, 4  ;;  %s67_s15 = sshll.u32 %s2027_s3, 4  ;;  %s44_s14 = int_to_ptr.vmem [resolvable:$true] %s43_s14  ;;  %s68_s15 = int_to_ptr.vmem [resolvable:$true] %s67_s15 }
  0x29   :  { %s1957_s16 = scalar_lea.vmem %s44_s14, 8192  ;;  %p1962_p2 = scmp.lt.s32.totalorder %s44_s14, %s44_s14 }
  0x2a   :  { %p1958_p1 = scmp.ne.s32.totalorder %s44_s14, %s1957_s16  ;;  %p1963_p3 = scmp.lt.s32.totalorder %s1957_s16, %s1957_s16 }
  0x2c   :  { %p1964_p4 = por %p1963_p3, %p1962_p2 }
  0x2e   :  { %p1965_p5 = pnand %p1964_p4, %p1958_p1 }
  0x30   :  { %1968 = shalt.err (!%p1965_p5)
}
  0x31   :  { %49 = dma.hbm_to_vmem [thread:$0]  %s2266_s2, 8192, %s44_s14, [#allocation6], %s2018_s21, %s2018_s21, %s2019_s22  }
  0x32   :  { %s1977_s0 = scalar_lea.vmem %s68_s15, 1024  ;;  %p1982_p7 = scmp.lt.s32.totalorder %s68_s15, %s68_s15 }
  0x33   :  { %p1978_p6 = scmp.ne.s32.totalorder %s68_s15, %s1977_s0  ;;  %p1983_p8 = scmp.lt.s32.totalorder %s1977_s0, %s1977_s0 }
  0x35   :  { %p1984_p9 = por %p1983_p8, %p1982_p7 }
  0x37   :  { %p1985_p10 = pnand %p1984_p9, %p1978_p6 }
  0x39   :  { %1988 = shalt.err (!%p1985_p10)
}
  0x3a   :  { %73 = dma.hbm_to_vmem [thread:$0]  %s2268_s4, 1024, %s68_s15, [#allocation9], %s2018_s21, %s2018_s21, %s2019_s22  }
  0x3b   :  { %2009 = dma.done.wait [#allocation3], 2048  }
  0x3c   :  { %2010 = vsyncadd [#allocation3], 4294965248 }
  0x3d   :  { %2011 = dma.done.wait [#allocation6], 24576  }
  0x3e   :  { %2012 = vsyncadd [#allocation6], 4294942720 }
  0x3f   :  { %2013 = dma.done.wait [#allocation9], 3072  }
  0x40   :  { %2014 = vsyncadd [#allocation9], 4294964224  ;;  %v132_v0 = vld [vmem:[#allocation5 + $0x68] sm:$0xff]  ;;  %v131_v2 = vld [vmem:[#allocation5 + $0x60] sm:$0xff]  ;;  %s2028_s2 = smov [#allocation11]  }
  0x41   :  { %v164_v1 = vld [vmem:[#allocation5 + $0x168] sm:$0xff]  ;;  %v272_v3 = vunpack.c.l.s8.bf16 %v132_v0  ;;  %v276_v4 = vunpack.c.h.s8.bf16 %v132_v0  ;;  %v163_v7 = vld [vmem:[#allocation5 + $0x160] sm:$0xff]  ;;  %v275_v8 = vunpack.c.h.s8.bf16 %v131_v2  ;;  %v271_v12 = vunpack.c.l.s8.bf16 %v131_v2  ;;  %v93_v32 = vld [vmem:[#allocation2 + $0x18] sm:$0xff]  ;;  %s1801_s4 = sshll.u32 %s2028_s2, 4  ;;  %s1802_s4 = int_to_ptr.vmem [resolvable:$true] %s1801_s4 }
  0x42   :  { %v336_v5 = vunpack.c.l.s8.bf16 %v164_v1  ;;  %v340_v6 = vunpack.c.h.s8.bf16 %v164_v1  ;;  %v339_v9 = vunpack.c.h.s8.bf16 %v163_v7  ;;  %v128_v10 = vld [vmem:[#allocation5 + $0x48] sm:$0xff]  ;;  %v335_v13 = vunpack.c.l.s8.bf16 %v163_v7  ;;  %v127_v16 = vld [vmem:[#allocation5 + $0x40] sm:$0xff]  ;;  %v101_v33 = vld [vmem:[#allocation2 + $0x58] sm:$0xff]  ;;  %s1989_s21 = scalar_lea.vmem %s1802_s4, 256  ;;  %p1994_p12 = scmp.lt.s32.totalorder %s1802_s4, %s1802_s4 }
  0x43   :  { %v160_v11 = vld [vmem:[#allocation5 + $0x148] sm:$0xff]  ;;  %503 = vmatprep.subr.bf16.mxu0 %v276_v4  ;;  %v268_v14 = vunpack.c.h.s8.bf16 %v128_v10  ;;  %v159_v17 = vld [vmem:[#allocation5 + $0x140] sm:$0xff]  ;;  %v267_v18 = vunpack.c.h.s8.bf16 %v127_v16  ;;  %v264_v20 = vunpack.c.l.s8.bf16 %v128_v10  ;;  %v263_v24 = vunpack.c.l.s8.bf16 %v127_v16  ;;  %p1990_p11 = scmp.ne.s32.totalorder %s1802_s4, %s1989_s21  ;;  %p1995_p13 = scmp.lt.s32.totalorder %s1989_s21, %s1989_s21 }
  0x44   :  { %546 = vmatprep.subr.bf16.mxu1 %v340_v6  ;;  %504 = vmatpush1.bf16.msra.mxu0 %v275_v8  ;;  %v332_v15 = vunpack.c.h.s8.bf16 %v160_v11  ;;  %v331_v19 = vunpack.c.h.s8.bf16 %v159_v17  ;;  %v328_v21 = vunpack.c.l.s8.bf16 %v160_v11  ;;  %v124_v22 = vld [vmem:[#allocation5 + $0x28] sm:$0xff]  ;;  %v327_v25 = vunpack.c.l.s8.bf16 %v159_v17  ;;  %v123_v28 = vld [vmem:[#allocation5 + $0x20] sm:$0xff] }
  0x45   :  { %547 = vmatpush1.bf16.msra.mxu1 %v339_v9  ;;  %505 = vmatprep.subr.bf16.mxu0 %v272_v3  ;;  %v156_v23 = vld [vmem:[#allocation5 + $0x128] sm:$0xff]  ;;  %v260_v26 = vunpack.c.h.s8.bf16 %v124_v22  ;;  %v155_v29 = vld [vmem:[#allocation5 + $0x120] sm:$0xff]  ;;  %v259_v34 = vunpack.c.h.s8.bf16 %v123_v28  ;;  %v256_v36 = vunpack.c.l.s8.bf16 %v124_v22  ;;  %v2088_v39 = vpack.c.bf16 %v101_v33, %v93_v32  ;;  %p1996_p0 = por %p1995_p13, %p1994_p12 }
  0x46   :  { %548 = vmatprep.subr.bf16.mxu1 %v336_v5  ;;  %v324_v27 = vunpack.c.h.s8.bf16 %v156_v23  ;;  %v91_v30 = vld [vmem:[#allocation2 + $0x8] sm:$0xff]  ;;  %v323_v35 = vunpack.c.h.s8.bf16 %v155_v29  ;;  %v320_v37 = vunpack.c.l.s8.bf16 %v156_v23  ;;  %v255_v42 = vunpack.c.l.s8.bf16 %v123_v28  ;;  %v119_v46 = vld [vmem:[#allocation5] sm:$0xff] }
  0x47   :  { %v99_v31 = vld [vmem:[#allocation2 + $0x48] sm:$0xff]  ;;  %578 = vmatprep.mubr.bf16.mxu1 %v2088_v39  ;;  %v319_v43 = vunpack.c.l.s8.bf16 %v155_v29  ;;  %v151_v47 = vld [vmem:[#allocation5 + $0x100] sm:$0xff]  ;;  %v251_v48 = vunpack.c.h.s8.bf16 %v119_v46  ;;  %v247_v54 = vunpack.c.l.s8.bf16 %v119_v46  ;;  %p1997_p1 = pnand %p1996_p0, %p1990_p11 }
  0x48   :  { %506 = vmatpush1.bf16.msra.mxu0 %v271_v12  ;;  %v2086_v38 = vpack.c.bf16 %v99_v31, %v91_v30  ;;  %v120_v40 = vld [vmem:[#allocation5 + $0x8] sm:$0xff]  ;;  %v315_v49 = vunpack.c.h.s8.bf16 %v151_v47  ;;  %v311_v55 = vunpack.c.l.s8.bf16 %v151_v47  ;;  %v147_v58 = vld [vmem:[#allocation5 + $0xe0] sm:$0xff] }
  0x49   :  { %549 = vmatpush1.bf16.msra.mxu1 %v335_v13  ;;  %507 = vmatprep.subr.bf16.mxu0 %v268_v14  ;;  %v152_v41 = vld [vmem:[#allocation5 + $0x108] sm:$0xff]  ;;  %v252_v44 = vunpack.c.h.s8.bf16 %v120_v40  ;;  %v248_v50 = vunpack.c.l.s8.bf16 %v120_v40  ;;  %v179_v59 = vld [vmem:[#allocation5 + $0x1e0] sm:$0xff]  ;;  %v307_v60 = vunpack.c.h.s8.bf16 %v147_v58  ;;  %v303_v2 = vunpack.c.l.s8.bf16 %v147_v58 }
  0x4a   :  { %550 = vmatprep.subr.bf16.mxu1 %v332_v15  ;;  %535 = vmatprep.mubr.bf16.mxu0 %v2086_v38  ;;  %v316_v45 = vunpack.c.h.s8.bf16 %v152_v41  ;;  %v312_v51 = vunpack.c.l.s8.bf16 %v152_v41  ;;  %v148_v52 = vld [vmem:[#allocation5 + $0xe8] sm:$0xff]  ;;  %v371_v61 = vunpack.c.h.s8.bf16 %v179_v59  ;;  %v367_v3 = vunpack.c.l.s8.bf16 %v179_v59  ;;  %v143_v6 = vld [vmem:[#allocation5 + $0xc0] sm:$0xff] }
  0x4b   :  { %v180_v53 = vld [vmem:[#allocation5 + $0x1e8] sm:$0xff]  ;;  %v308_v56 = vunpack.c.h.s8.bf16 %v148_v52  ;;  %v304_v62 = vunpack.c.l.s8.bf16 %v148_v52  ;;  %v175_v7 = vld [vmem:[#allocation5 + $0x1c0] sm:$0xff]  ;;  %v299_v8 = vunpack.c.h.s8.bf16 %v143_v6  ;;  %v295_v14 = vunpack.c.l.s8.bf16 %v143_v6 }
  0x4c   :  { %508 = vmatpush1.bf16.msra.mxu0 %v267_v18  ;;  %v372_v57 = vunpack.c.h.s8.bf16 %v180_v53  ;;  %v368_v63 = vunpack.c.l.s8.bf16 %v180_v53  ;;  %v144_v0 = vld [vmem:[#allocation5 + $0xc8] sm:$0xff]  ;;  %v363_v9 = vunpack.c.h.s8.bf16 %v175_v7  ;;  %v359_v15 = vunpack.c.l.s8.bf16 %v175_v7  ;;  %v139_v18 = vld [vmem:[#allocation5 + $0xa0] sm:$0xff] }
  0x4d   :  { %551 = vmatpush1.bf16.msra.mxu1 %v331_v19  ;;  %509 = vmatprep.subr.bf16.mxu0 %v264_v20  ;;  %v176_v1 = vld [vmem:[#allocation5 + $0x1c8] sm:$0xff]  ;;  %v300_v4 = vunpack.c.h.s8.bf16 %v144_v0  ;;  %v296_v10 = vunpack.c.l.s8.bf16 %v144_v0  ;;  %v171_v19 = vld [vmem:[#allocation5 + $0x1a0] sm:$0xff]  ;;  %v291_v20 = vunpack.c.h.s8.bf16 %v139_v18 }
  0x4e   :  { %552 = vmatprep.subr.bf16.mxu1 %v328_v21  ;;  %v364_v5 = vunpack.c.h.s8.bf16 %v176_v1  ;;  %v360_v11 = vunpack.c.l.s8.bf16 %v176_v1  ;;  %v140_v12 = vld [vmem:[#allocation5 + $0xa8] sm:$0xff]  ;;  %v355_v21 = vunpack.c.h.s8.bf16 %v171_v19  ;;  %v135_v30 = vld [vmem:[#allocation5 + $0x80] sm:$0xff] }
  0x4f   :  { %v172_v13 = vld [vmem:[#allocation5 + $0x1a8] sm:$0xff]  ;;  %v292_v16 = vunpack.c.h.s8.bf16 %v140_v12  ;;  %v288_v22 = vunpack.c.l.s8.bf16 %v140_v12  ;;  %v167_v31 = vld [vmem:[#allocation5 + $0x180] sm:$0xff]  ;;  %v283_v32 = vunpack.c.h.s8.bf16 %v135_v30  ;;  %v279_v41 = vunpack.c.l.s8.bf16 %v135_v30 }
  0x50   :  { %510 = vmatpush1.bf16.msra.mxu0 %v263_v24  ;;  %v356_v17 = vunpack.c.h.s8.bf16 %v172_v13  ;;  %v352_v23 = vunpack.c.l.s8.bf16 %v172_v13  ;;  %v136_v24 = vld [vmem:[#allocation5 + $0x88] sm:$0xff]  ;;  %v347_v33 = vunpack.c.h.s8.bf16 %v167_v31  ;;  %v90_v40 = vld [vmem:[#allocation2] sm:$0xff] }
  0x51   :  { %553 = vmatpush1.bf16.msra.mxu1 %v327_v25  ;;  %511 = vmatprep.subr.bf16.mxu0 %v260_v26  ;;  %v168_v25 = vld [vmem:[#allocation5 + $0x188] sm:$0xff]  ;;  %v287_v26 = vunpack.c.l.s8.bf16 %v139_v18  ;;  %v284_v28 = vunpack.c.h.s8.bf16 %v136_v24 }
  0x52   :  { %554 = vmatprep.subr.bf16.mxu1 %v324_v27  ;;  %v351_v27 = vunpack.c.l.s8.bf16 %v171_v19  ;;  %v348_v29 = vunpack.c.h.s8.bf16 %v168_v25  ;;  %v103_v53 = vld [vmem:[#allocation2 + $0x68] sm:$0xff] }
  0x54   :  { %512 = vmatpush1.bf16.msra.mxu0 %v259_v34  ;;  %v280_v34 = vunpack.c.l.s8.bf16 %v136_v24 }
  0x55   :  { %555 = vmatpush1.bf16.msra.mxu1 %v323_v35  ;;  %513 = vmatprep.subr.bf16.mxu0 %v256_v36  ;;  %v344_v35 = vunpack.c.l.s8.bf16 %v168_v25  ;;  %v196_v36 = vld [vmem:[#allocation5 + $0x268] sm:$0xff] }
  0x56   :  { %556 = vmatprep.subr.bf16.mxu1 %v320_v37  ;;  %v228_v37 = vld [vmem:[#allocation5 + $0x368] sm:$0xff]  ;;  %v404_v46 = vunpack.c.h.s8.bf16 %v196_v36  ;;  %v400_v58 = vunpack.c.l.s8.bf16 %v196_v36 }
  0x57   :  { %v468_v47 = vunpack.c.h.s8.bf16 %v228_v37  ;;  %v464_v59 = vunpack.c.l.s8.bf16 %v228_v37 }
  0x58   :  { %514 = vmatpush1.bf16.msra.mxu0 %v255_v42  ;;  %v343_v42 = vunpack.c.l.s8.bf16 %v167_v31 }
  0x59   :  { %557 = vmatpush1.bf16.msra.mxu1 %v319_v43  ;;  %515 = vmatprep.subr.bf16.mxu0 %v252_v44  ;;  %v98_v43 = vld [vmem:[#allocation2 + $0x40] sm:$0xff]  ;;  %v92_v44 = vld [vmem:[#allocation2 + $0x10] sm:$0xff] }
  0x5a   :  { %558 = vmatprep.subr.bf16.mxu1 %v316_v45  ;;  %v100_v45 = vld [vmem:[#allocation2 + $0x50] sm:$0xff] }
  0x5b   :  { %v2094_v52 = vpack.c.bf16 %v100_v45, %v92_v44 }
  0x5c   :  { %516 = vmatpush1.bf16.msra.mxu0 %v251_v48  ;;  %v195_v48 = vld [vmem:[#allocation5 + $0x260] sm:$0xff] }
  0x5d   :  { %559 = vmatpush1.bf16.msra.mxu1 %v315_v49  ;;  %517 = vmatprep.subr.bf16.mxu0 %v248_v50  ;;  %v227_v49 = vld [vmem:[#allocation5 + $0x360] sm:$0xff]  ;;  %v95_v50 = vld [vmem:[#allocation2 + $0x28] sm:$0xff]  ;;  %v399_v0 = vunpack.c.l.s8.bf16 %v195_v48 }
  0x5e   :  { %560 = vmatprep.subr.bf16.mxu1 %v312_v51  ;;  %v2092_v51 = vpack.c.bf16 %v98_v43, %v90_v40  ;;  %v463_v1 = vunpack.c.l.s8.bf16 %v227_v49  ;;  %v243_v43 = vld [vmem:[#allocation5 + $0x3e0] sm:$0xff] }
  0x5f   :  { %v499_v45 = vunpack.c.h.s8.bf16 %v243_v43 }
  0x60   :  { %518 = vmatpush1.bf16.msra.mxu0 %v247_v54  ;;  %v97_v54 = vld [vmem:[#allocation2 + $0x38] sm:$0xff] }
  0x61   :  { %561 = vmatpush1.bf16.msra.mxu1 %v311_v55  ;;  %519 = vmatprep.subr.bf16.mxu0 %v308_v56  ;;  %v105_v55 = vld [vmem:[#allocation2 + $0x78] sm:$0xff]  ;;  %v403_v56 = vunpack.c.h.s8.bf16 %v195_v48  ;;  %v208_v48 = vld [vmem:[#allocation5 + $0x2c8] sm:$0xff] }
  0x62   :  { %562 = vmatprep.subr.bf16.mxu1 %v372_v57  ;;  %v467_v57 = vunpack.c.h.s8.bf16 %v227_v49  ;;  %v240_v49 = vld [vmem:[#allocation5 + $0x3c8] sm:$0xff] }
  0x64   :  { %520 = vmatpush2.bf16.msra.mxu0 %v307_v60  ;;  %v192_v60 = vld [vmem:[#allocation5 + $0x248] sm:$0xff] }
  0x65   :  { %563 = vmatpush2.bf16.msra.mxu1 %v371_v61  ;;  %521 = vmatprep.subr.bf16.mxu0 %v304_v62  ;;  %v224_v61 = vld [vmem:[#allocation5 + $0x348] sm:$0xff]  ;;  %v2096_v62 = vpack.c.bf16 %v103_v53, %v95_v50  ;;  %v495_v53 = vunpack.c.l.s8.bf16 %v243_v43 }
  0x66   :  { %564 = vmatprep.subr.bf16.mxu1 %v368_v63  ;;  %v2098_v63 = vpack.c.bf16 %v105_v55, %v97_v54  ;;  %v428_v54 = vunpack.c.h.s8.bf16 %v208_v48  ;;  %v492_v55 = vunpack.c.h.s8.bf16 %v240_v49 }
  0x68   :  { %522 = vmatpush2.bf16.msra.mxu0 %v303_v2  ;;  %v396_v2 = vunpack.c.h.s8.bf16 %v192_v60 }
  0x69   :  { %565 = vmatpush2.bf16.msra.mxu1 %v367_v3  ;;  %523 = vmatprep.subr.bf16.mxu0 %v300_v4  ;;  %v460_v3 = vunpack.c.h.s8.bf16 %v224_v61  ;;  %v191_v4 = vld [vmem:[#allocation5 + $0x240] sm:$0xff] }
  0x6a   :  { %566 = vmatprep.subr.bf16.mxu1 %v364_v5  ;;  %v223_v5 = vld [vmem:[#allocation5 + $0x340] sm:$0xff]  ;;  %v395_v6 = vunpack.c.h.s8.bf16 %v191_v4  ;;  %v391_v12 = vunpack.c.l.s8.bf16 %v191_v4 }
  0x6b   :  { %v459_v7 = vunpack.c.h.s8.bf16 %v223_v5  ;;  %v455_v13 = vunpack.c.l.s8.bf16 %v223_v5 }
  0x6c   :  { %524 = vmatpush2.bf16.msra.mxu0 %v299_v8  ;;  %v392_v8 = vunpack.c.l.s8.bf16 %v192_v60  ;;  %v424_v60 = vunpack.c.l.s8.bf16 %v208_v48 }
  0x6d   :  { %567 = vmatpush2.bf16.msra.mxu1 %v363_v9  ;;  %525 = vmatprep.subr.bf16.mxu0 %v296_v10  ;;  %v456_v9 = vunpack.c.l.s8.bf16 %v224_v61  ;;  %v188_v10 = vld [vmem:[#allocation5 + $0x228] sm:$0xff]  ;;  %v488_v61 = vunpack.c.l.s8.bf16 %v240_v49 }
  0x6e   :  { %568 = vmatprep.subr.bf16.mxu1 %v360_v11  ;;  %v220_v11 = vld [vmem:[#allocation5 + $0x328] sm:$0xff] }
  0x70   :  { %526 = vmatpush2.bf16.msra.mxu0 %v295_v14  ;;  %v388_v14 = vunpack.c.h.s8.bf16 %v188_v10 }
  0x71   :  { %569 = vmatpush2.bf16.msra.mxu1 %v359_v15  ;;  %527 = vmatprep.subr.bf16.mxu0 %v292_v16  ;;  %v452_v15 = vunpack.c.h.s8.bf16 %v220_v11  ;;  %v187_v16 = vld [vmem:[#allocation5 + $0x220] sm:$0xff] }
  0x72   :  { %570 = vmatprep.subr.bf16.mxu1 %v356_v17  ;;  %v219_v17 = vld [vmem:[#allocation5 + $0x320] sm:$0xff]  ;;  %v387_v18 = vunpack.c.h.s8.bf16 %v187_v16  ;;  %v383_v24 = vunpack.c.l.s8.bf16 %v187_v16 }
  0x73   :  { %v451_v19 = vunpack.c.h.s8.bf16 %v219_v17  ;;  %v447_v25 = vunpack.c.l.s8.bf16 %v219_v17 }
  0x74   :  { %528 = vmatpush2.bf16.msra.mxu0 %v291_v20  ;;  %v384_v20 = vunpack.c.l.s8.bf16 %v188_v10 }
  0x75   :  { %571 = vmatpush2.bf16.msra.mxu1 %v355_v21  ;;  %529 = vmatprep.subr.bf16.mxu0 %v288_v22  ;;  %v448_v21 = vunpack.c.l.s8.bf16 %v220_v11  ;;  %v184_v22 = vld [vmem:[#allocation5 + $0x208] sm:$0xff] }
  0x76   :  { %572 = vmatprep.subr.bf16.mxu1 %v352_v23  ;;  %v216_v23 = vld [vmem:[#allocation5 + $0x308] sm:$0xff] }
  0x78   :  { %530 = vmatpush2.bf16.msra.mxu0 %v287_v26  ;;  %v380_v26 = vunpack.c.h.s8.bf16 %v184_v22 }
  0x79   :  { %573 = vmatpush2.bf16.msra.mxu1 %v351_v27  ;;  %531 = vmatprep.subr.bf16.mxu0 %v284_v28  ;;  %v444_v27 = vunpack.c.h.s8.bf16 %v216_v23  ;;  %v183_v28 = vld [vmem:[#allocation5 + $0x200] sm:$0xff] }
  0x7a   :  { %574 = vmatprep.subr.bf16.mxu1 %v348_v29  ;;  %v215_v29 = vld [vmem:[#allocation5 + $0x300] sm:$0xff]  ;;  %v379_v30 = vunpack.c.h.s8.bf16 %v183_v28  ;;  %v375_v36 = vunpack.c.l.s8.bf16 %v183_v28 }
  0x7b   :  { %v443_v31 = vunpack.c.h.s8.bf16 %v215_v29  ;;  %v439_v37 = vunpack.c.l.s8.bf16 %v215_v29  ;;  %v102_v29 = vld [vmem:[#allocation2 + $0x60] sm:$0xff] }
  0x7c   :  { %532 = vmatpush2.bf16.msra.mxu0 %v283_v32  ;;  %v376_v32 = vunpack.c.l.s8.bf16 %v184_v22 }
  0x7d   :  { %575 = vmatpush2.bf16.msra.mxu1 %v347_v33  ;;  %533 = vmatprep.subr.bf16.mxu0 %v280_v34  ;;  %v440_v33 = vunpack.c.l.s8.bf16 %v216_v23  ;;  %v212_v34 = vld [vmem:[#allocation5 + $0x2e8] sm:$0xff] }
  0x7e   :  { %576 = vmatprep.subr.bf16.mxu1 %v344_v35  ;;  %v244_v35 = vld [vmem:[#allocation5 + $0x3e8] sm:$0xff]  ;;  %v436_v40 = vunpack.c.h.s8.bf16 %v212_v34 }
  0x80   :  { %534 = vmatpush2.bf16.msra.mxu0 %v279_v41  ;;  %v500_v41 = vunpack.c.h.s8.bf16 %v244_v35 }
  0x81   :  { %577 = vmatpush2.bf16.msra.mxu1 %v343_v42  ;;  %589 = vmatprep.subr.bf16.mxu0 %v404_v46  ;;  %v211_v42 = vld [vmem:[#allocation5 + $0x2e0] sm:$0xff]  ;;  %v432_v46 = vunpack.c.l.s8.bf16 %v212_v34  ;;  %v133_v34 = vld [vmem:[#allocation5 + $0x70] sm:$0xff] }
  0x82   :  { %632 = vmatprep.subr.bf16.mxu1 %v468_v47  ;;  %v435_v44 = vunpack.c.h.s8.bf16 %v211_v42  ;;  %v496_v47 = vunpack.c.l.s8.bf16 %v244_v35  ;;  %v431_v50 = vunpack.c.l.s8.bf16 %v211_v42  ;;  %v165_v35 = vld [vmem:[#allocation5 + $0x170] sm:$0xff] }
  0x83   :  { %536 = vmatmul.mubr.bf16.vlgmr.msra.gmra.mxu0 %v2092_v51 }
  0x84   :  { %579 = vmatmul.mubr.bf16.vlgmr.msra.gmra.mxu1 %v2094_v52  ;;  %590 = vmatpush1.bf16.msra.mxu0 %v403_v56  ;;  %v207_v56 = vld [vmem:[#allocation5 + $0x2c0] sm:$0xff] }
  0x85   :  { %633 = vmatpush1.bf16.msra.mxu1 %v467_v57  ;;  %591 = vmatprep.subr.bf16.mxu0 %v400_v58  ;;  %v239_v57 = vld [vmem:[#allocation5 + $0x3c0] sm:$0xff]  ;;  %v427_v58 = vunpack.c.h.s8.bf16 %v207_v56 }
  0x86   :  { %634 = vmatprep.subr.bf16.mxu1 %v464_v59  ;;  %621 = vmatprep.mubr.bf16.mxu0 %v2096_v62  ;;  %v491_v59 = vunpack.c.h.s8.bf16 %v239_v57 }
  0x87   :  { %664 = vmatprep.mubr.bf16.mxu1 %v2098_v63 }
  0x88   :  { %592 = vmatpush1.bf16.msra.mxu0 %v399_v0  ;;  %v204_v0 = vld [vmem:[#allocation5 + $0x2a8] sm:$0xff] }
  0x89   :  { %635 = vmatpush1.bf16.msra.mxu1 %v463_v1  ;;  %593 = vmatprep.subr.bf16.mxu0 %v396_v2  ;;  %v236_v1 = vld [vmem:[#allocation5 + $0x3a8] sm:$0xff]  ;;  %v423_v2 = vunpack.c.l.s8.bf16 %v207_v56  ;;  %v420_v4 = vunpack.c.h.s8.bf16 %v204_v0  ;;  %v416_v10 = vunpack.c.l.s8.bf16 %v204_v0 }
  0x8a   :  { %636 = vmatprep.subr.bf16.mxu1 %v460_v3  ;;  %v487_v3 = vunpack.c.l.s8.bf16 %v239_v57  ;;  %v484_v5 = vunpack.c.h.s8.bf16 %v236_v1  ;;  %v480_v11 = vunpack.c.l.s8.bf16 %v236_v1  ;;  %v125_v1 = vld [vmem:[#allocation5 + $0x30] sm:$0xff] }
  0x8c   :  { %594 = vmatpush1.bf16.msra.mxu0 %v395_v6  ;;  %v203_v6 = vld [vmem:[#allocation5 + $0x2a0] sm:$0xff] }
  0x8d   :  { %637 = vmatpush1.bf16.msra.mxu1 %v459_v7  ;;  %595 = vmatprep.subr.bf16.mxu0 %v392_v8  ;;  %v235_v7 = vld [vmem:[#allocation5 + $0x3a0] sm:$0xff]  ;;  %v419_v8 = vunpack.c.h.s8.bf16 %v203_v6 }
  0x8e   :  { %638 = vmatprep.subr.bf16.mxu1 %v456_v9  ;;  %v483_v9 = vunpack.c.h.s8.bf16 %v235_v7 }
  0x90   :  { %596 = vmatpush1.bf16.msra.mxu0 %v391_v12  ;;  %v200_v12 = vld [vmem:[#allocation5 + $0x288] sm:$0xff] }
  0x91   :  { %639 = vmatpush1.bf16.msra.mxu1 %v455_v13  ;;  %597 = vmatprep.subr.bf16.mxu0 %v388_v14  ;;  %v232_v13 = vld [vmem:[#allocation5 + $0x388] sm:$0xff]  ;;  %v415_v14 = vunpack.c.l.s8.bf16 %v203_v6  ;;  %v412_v16 = vunpack.c.h.s8.bf16 %v200_v12  ;;  %v408_v22 = vunpack.c.l.s8.bf16 %v200_v12  ;;  %v122_v6 = vld [vmem:[#allocation5 + $0x18] sm:$0xff]  ;;  %v121_v12 = vld [vmem:[#allocation5 + $0x10] sm:$0xff] }
  0x92   :  { %640 = vmatprep.subr.bf16.mxu1 %v452_v15  ;;  %v479_v15 = vunpack.c.l.s8.bf16 %v235_v7  ;;  %v476_v17 = vunpack.c.h.s8.bf16 %v232_v13  ;;  %v472_v23 = vunpack.c.l.s8.bf16 %v232_v13  ;;  %v154_v7 = vld [vmem:[#allocation5 + $0x118] sm:$0xff]  ;;  %v153_v13 = vld [vmem:[#allocation5 + $0x110] sm:$0xff] }
  0x94   :  { %598 = vmatpush1.bf16.msra.mxu0 %v387_v18  ;;  %v199_v18 = vld [vmem:[#allocation5 + $0x280] sm:$0xff] }
  0x95   :  { %641 = vmatpush1.bf16.msra.mxu1 %v451_v19  ;;  %599 = vmatprep.subr.bf16.mxu0 %v384_v20  ;;  %v231_v19 = vld [vmem:[#allocation5 + $0x380] sm:$0xff]  ;;  %v411_v20 = vunpack.c.h.s8.bf16 %v199_v18 }
  0x96   :  { %642 = vmatprep.subr.bf16.mxu1 %v448_v21  ;;  %v475_v21 = vunpack.c.h.s8.bf16 %v231_v19  ;;  %v471_v28 = vunpack.c.l.s8.bf16 %v231_v19  ;;  %v182_v19 = vld [vmem:[#allocation5 + $0x1f8] sm:$0xff] }
  0x98   :  { %600 = vmatpush1.bf16.msra.mxu0 %v383_v24  ;;  %v134_v24 = vld [vmem:[#allocation5 + $0x78] sm:$0xff] }
  0x99   :  { %643 = vmatpush1.bf16.msra.mxu1 %v447_v25  ;;  %601 = vmatprep.subr.bf16.mxu0 %v380_v26  ;;  %v166_v25 = vld [vmem:[#allocation5 + $0x178] sm:$0xff]  ;;  %v94_v26 = vld [vmem:[#allocation2 + $0x20] sm:$0xff]  ;;  %v274_v42 = vunpack.c.l.s8.bf16 %v134_v24 }
  0x9a   :  { %644 = vmatprep.subr.bf16.mxu1 %v444_v27  ;;  %v407_v27 = vunpack.c.l.s8.bf16 %v199_v18  ;;  %v338_v43 = vunpack.c.l.s8.bf16 %v166_v25  ;;  %v150_v18 = vld [vmem:[#allocation5 + $0xf8] sm:$0xff] }
  0x9c   :  { %602 = vmatpush1.bf16.msra.mxu0 %v379_v30  ;;  %v96_v30 = vld [vmem:[#allocation2 + $0x30] sm:$0xff] }
  0x9d   :  { %645 = vmatpush1.bf16.msra.mxu1 %v443_v31  ;;  %603 = vmatprep.subr.bf16.mxu0 %v376_v32  ;;  %v104_v31 = vld [vmem:[#allocation2 + $0x70] sm:$0xff]  ;;  %v278_v32 = vunpack.c.h.s8.bf16 %v134_v24 }
  0x9e   :  { %646 = vmatprep.subr.bf16.mxu1 %v440_v33  ;;  %v342_v33 = vunpack.c.h.s8.bf16 %v166_v25  ;;  %v149_v24 = vld [vmem:[#allocation5 + $0xf0] sm:$0xff] }
  0x9f   :  { %v181_v25 = vld [vmem:[#allocation5 + $0x1f0] sm:$0xff] }
  0xa0   :  { %604 = vmatpush1.bf16.msra.mxu0 %v375_v36  ;;  %v2104_v36 = vpack.c.bf16 %v102_v29, %v94_v26  ;;  %v309_v26 = vunpack.c.h.s8.bf16 %v149_v24  ;;  %v370_v29 = vunpack.c.l.s8.bf16 %v182_v19 }
  0xa1   :  { %647 = vmatpush1.bf16.msra.mxu1 %v439_v37  ;;  %605 = vmatprep.subr.bf16.mxu0 %v436_v40  ;;  %v2106_v37 = vpack.c.bf16 %v104_v31, %v96_v30  ;;  %v277_v40 = vunpack.c.h.s8.bf16 %v133_v34  ;;  %v146_v30 = vld [vmem:[#allocation5 + $0xd8] sm:$0xff] }
  0xa2   :  { %648 = vmatprep.subr.bf16.mxu1 %v500_v41  ;;  %v341_v41 = vunpack.c.h.s8.bf16 %v165_v35  ;;  %v178_v31 = vld [vmem:[#allocation5 + $0x1d8] sm:$0xff] }
  0xa4   :  { %606 = vmatpush2.bf16.msra.mxu0 %v435_v44  ;;  %v130_v44 = vld [vmem:[#allocation5 + $0x58] sm:$0xff] }
  0xa5   :  { %649 = vmatpush2.bf16.msra.mxu1 %v499_v45  ;;  %607 = vmatprep.subr.bf16.mxu0 %v432_v46  ;;  %v162_v45 = vld [vmem:[#allocation5 + $0x158] sm:$0xff]  ;;  %v273_v46 = vunpack.c.l.s8.bf16 %v133_v34  ;;  %v270_v48 = vunpack.c.h.s8.bf16 %v130_v44  ;;  %v266_v56 = vunpack.c.l.s8.bf16 %v130_v44  ;;  %v302_v34 = vunpack.c.h.s8.bf16 %v146_v30 }
  0xa6   :  { %650 = vmatprep.subr.bf16.mxu1 %v496_v47  ;;  %v337_v47 = vunpack.c.l.s8.bf16 %v165_v35  ;;  %v334_v49 = vunpack.c.h.s8.bf16 %v162_v45  ;;  %v330_v57 = vunpack.c.l.s8.bf16 %v162_v45  ;;  %v366_v35 = vunpack.c.h.s8.bf16 %v178_v31 }
  0xa7   :  { %v298_v44 = vunpack.c.l.s8.bf16 %v146_v30  ;;  %v362_v45 = vunpack.c.l.s8.bf16 %v178_v31  ;;  %v190_v30 = vld [vmem:[#allocation5 + $0x238] sm:$0xff] }
  0xa8   :  { %608 = vmatpush2.bf16.msra.mxu0 %v431_v50  ;;  %v129_v50 = vld [vmem:[#allocation5 + $0x50] sm:$0xff]  ;;  %v222_v31 = vld [vmem:[#allocation5 + $0x338] sm:$0xff] }
  0xa9   :  { %651 = vmatpush2.bf16.msra.mxu1 %v495_v53  ;;  %609 = vmatprep.subr.bf16.mxu0 %v428_v54  ;;  %v161_v53 = vld [vmem:[#allocation5 + $0x150] sm:$0xff]  ;;  %v269_v54 = vunpack.c.h.s8.bf16 %v129_v50 }
  0xaa   :  { %652 = vmatprep.subr.bf16.mxu1 %v492_v55  ;;  %v333_v55 = vunpack.c.h.s8.bf16 %v161_v53 }
  0xac   :  { %610 = vmatpush2.bf16.msra.mxu0 %v427_v58  ;;  %v126_v58 = vld [vmem:[#allocation5 + $0x38] sm:$0xff] }
  0xad   :  { %653 = vmatpush2.bf16.msra.mxu1 %v491_v59  ;;  %611 = vmatprep.subr.bf16.mxu0 %v424_v60  ;;  %v158_v59 = vld [vmem:[#allocation5 + $0x138] sm:$0xff]  ;;  %v265_v60 = vunpack.c.l.s8.bf16 %v129_v50  ;;  %v262_v0 = vunpack.c.h.s8.bf16 %v126_v58 }
  0xae   :  { %654 = vmatprep.subr.bf16.mxu1 %v488_v61  ;;  %v329_v61 = vunpack.c.l.s8.bf16 %v161_v53 }
  0xb0   :  { %612 = vmatpush2.bf16.msra.mxu0 %v423_v2  ;;  %v261_v2 = vunpack.c.h.s8.bf16 %v125_v1 }
  0xb1   :  { %655 = vmatpush2.bf16.msra.mxu1 %v487_v3  ;;  %613 = vmatprep.subr.bf16.mxu0 %v420_v4  ;;  %v258_v4 = vunpack.c.l.s8.bf16 %v126_v58 }
  0xb2   :  { %656 = vmatprep.subr.bf16.mxu1 %v484_v5  ;;  %v322_v5 = vunpack.c.l.s8.bf16 %v158_v59 }
  0xb4   :  { %614 = vmatpush2.bf16.msra.mxu0 %v419_v8  ;;  %v257_v8 = vunpack.c.l.s8.bf16 %v125_v1 }
  0xb5   :  { %657 = vmatpush2.bf16.msra.mxu1 %v483_v9  ;;  %615 = vmatprep.subr.bf16.mxu0 %v416_v10  ;;  %v254_v10 = vunpack.c.h.s8.bf16 %v122_v6 }
  0xb6   :  { %658 = vmatprep.subr.bf16.mxu1 %v480_v11  ;;  %v318_v11 = vunpack.c.h.s8.bf16 %v154_v7 }
  0xb8   :  { %616 = vmatpush2.bf16.msra.mxu0 %v415_v14  ;;  %v253_v14 = vunpack.c.h.s8.bf16 %v121_v12 }
  0xb9   :  { %659 = vmatpush2.bf16.msra.mxu1 %v479_v15  ;;  %617 = vmatprep.subr.bf16.mxu0 %v412_v16  ;;  %v317_v15 = vunpack.c.h.s8.bf16 %v153_v13  ;;  %v250_v16 = vunpack.c.l.s8.bf16 %v122_v6 }
  0xba   :  { %660 = vmatprep.subr.bf16.mxu1 %v476_v17  ;;  %v314_v17 = vunpack.c.l.s8.bf16 %v154_v7 }
  0xbc   :  { %618 = vmatpush2.bf16.msra.mxu0 %v411_v20  ;;  %v249_v20 = vunpack.c.l.s8.bf16 %v121_v12 }
  0xbd   :  { %661 = vmatpush2.bf16.msra.mxu1 %v475_v21  ;;  %619 = vmatprep.subr.bf16.mxu0 %v408_v22  ;;  %v313_v21 = vunpack.c.l.s8.bf16 %v153_v13  ;;  %v310_v22 = vunpack.c.h.s8.bf16 %v150_v18 }
  0xbe   :  { %662 = vmatprep.subr.bf16.mxu1 %v472_v23  ;;  %v374_v23 = vunpack.c.h.s8.bf16 %v182_v19 }
  0xc0   :  { %620 = vmatpush2.bf16.msra.mxu0 %v407_v27  ;;  %v373_v27 = vunpack.c.h.s8.bf16 %v181_v25 }
  0xc1   :  { %663 = vmatpush2.bf16.msra.mxu1 %v471_v28  ;;  %675 = vmatprep.subr.bf16.mxu0 %v278_v32  ;;  %v306_v28 = vunpack.c.l.s8.bf16 %v150_v18  ;;  %v305_v32 = vunpack.c.l.s8.bf16 %v149_v24 }
  0xc2   :  { %718 = vmatprep.subr.bf16.mxu1 %v342_v33  ;;  %v369_v33 = vunpack.c.l.s8.bf16 %v181_v25 }
  0xc3   :  { %622 = vmatmul.mubr.bf16.vlgmr.msra.gmra.mxu0 %v2104_v36 }
  0xc4   :  { %665 = vmatmul.mubr.bf16.vlgmr.msra.gmra.mxu1 %v2106_v37  ;;  %676 = vmatpush1.bf16.msra.mxu0 %v277_v40  ;;  %v145_v40 = vld [vmem:[#allocation5 + $0xd0] sm:$0xff] }
  0xc5   :  { %719 = vmatpush1.bf16.msra.mxu1 %v341_v41  ;;  %677 = vmatprep.subr.bf16.mxu0 %v274_v42  ;;  %v177_v41 = vld [vmem:[#allocation5 + $0x1d0] sm:$0xff]  ;;  %v301_v42 = vunpack.c.h.s8.bf16 %v145_v40 }
  0xc6   :  { %720 = vmatprep.subr.bf16.mxu1 %v338_v43  ;;  %707 = vmatprep.mubr.bf16.mxu0 %v2086_v38  ;;  %v326_v38 = vunpack.c.h.s8.bf16 %v158_v59  ;;  %v365_v43 = vunpack.c.h.s8.bf16 %v177_v41 }
  0xc7   :  { %750 = vmatprep.mubr.bf16.mxu1 %v2088_v39  ;;  %v157_v39 = vld [vmem:[#allocation5 + $0x130] sm:$0xff] }
  0xc8   :  { %678 = vmatpush1.bf16.msra.mxu0 %v273_v46  ;;  %v325_v3 = vunpack.c.h.s8.bf16 %v157_v39  ;;  %v321_v9 = vunpack.c.l.s8.bf16 %v157_v39  ;;  %v142_v46 = vld [vmem:[#allocation5 + $0xb8] sm:$0xff] }
  0xc9   :  { %721 = vmatpush1.bf16.msra.mxu1 %v337_v47  ;;  %679 = vmatprep.subr.bf16.mxu0 %v270_v48  ;;  %v174_v47 = vld [vmem:[#allocation5 + $0x1b8] sm:$0xff]  ;;  %v297_v48 = vunpack.c.l.s8.bf16 %v145_v40  ;;  %v294_v50 = vunpack.c.h.s8.bf16 %v142_v46  ;;  %v290_v58 = vunpack.c.l.s8.bf16 %v142_v46 }
  0xca   :  { %722 = vmatprep.subr.bf16.mxu1 %v334_v49  ;;  %v361_v49 = vunpack.c.l.s8.bf16 %v177_v41  ;;  %v358_v53 = vunpack.c.h.s8.bf16 %v174_v47  ;;  %v354_v59 = vunpack.c.l.s8.bf16 %v174_v47 }
  0xcc   :  { %680 = vmatpush1.bf16.msra.mxu0 %v269_v54  ;;  %v141_v54 = vld [vmem:[#allocation5 + $0xb0] sm:$0xff] }
  0xcd   :  { %723 = vmatpush1.bf16.msra.mxu1 %v333_v55  ;;  %681 = vmatprep.subr.bf16.mxu0 %v266_v56  ;;  %v173_v55 = vld [vmem:[#allocation5 + $0x1b0] sm:$0xff]  ;;  %v293_v56 = vunpack.c.h.s8.bf16 %v141_v54 }
  0xce   :  { %724 = vmatprep.subr.bf16.mxu1 %v330_v57  ;;  %v357_v57 = vunpack.c.h.s8.bf16 %v173_v55 }
  0xd0   :  { %682 = vmatpush1.bf16.msra.mxu0 %v265_v60  ;;  %v138_v60 = vld [vmem:[#allocation5 + $0x98] sm:$0xff] }
  0xd1   :  { %725 = vmatpush1.bf16.msra.mxu1 %v329_v61  ;;  %683 = vmatprep.subr.bf16.mxu0 %v262_v0  ;;  %v170_v61 = vld [vmem:[#allocation5 + $0x198] sm:$0xff]  ;;  %v289_v0 = vunpack.c.l.s8.bf16 %v141_v54  ;;  %v286_v1 = vunpack.c.h.s8.bf16 %v138_v60  ;;  %v282_v6 = vunpack.c.l.s8.bf16 %v138_v60 }
  0xd2   :  { %726 = vmatprep.subr.bf16.mxu1 %v326_v38  ;;  %v353_v38 = vunpack.c.l.s8.bf16 %v173_v55  ;;  %v350_v39 = vunpack.c.h.s8.bf16 %v170_v61  ;;  %v346_v7 = vunpack.c.l.s8.bf16 %v170_v61 }
  0xd4   :  { %684 = vmatpush1.bf16.msra.mxu0 %v261_v2  ;;  %v137_v2 = vld [vmem:[#allocation5 + $0x90] sm:$0xff] }
  0xd5   :  { %727 = vmatpush1.bf16.msra.mxu1 %v325_v3  ;;  %685 = vmatprep.subr.bf16.mxu0 %v258_v4  ;;  %v169_v3 = vld [vmem:[#allocation5 + $0x190] sm:$0xff]  ;;  %v285_v4 = vunpack.c.h.s8.bf16 %v137_v2 }
  0xd6   :  { %728 = vmatprep.subr.bf16.mxu1 %v322_v5  ;;  %v349_v5 = vunpack.c.h.s8.bf16 %v169_v3 }
  0xd8   :  { %686 = vmatpush1.bf16.msra.mxu0 %v257_v8  ;;  %v198_v8 = vld [vmem:[#allocation5 + $0x278] sm:$0xff] }
  0xd9   :  { %729 = vmatpush1.bf16.msra.mxu1 %v321_v9  ;;  %687 = vmatprep.subr.bf16.mxu0 %v254_v10  ;;  %v230_v9 = vld [vmem:[#allocation5 + $0x378] sm:$0xff]  ;;  %v281_v10 = vunpack.c.l.s8.bf16 %v137_v2  ;;  %v406_v12 = vunpack.c.h.s8.bf16 %v198_v8  ;;  %v402_v18 = vunpack.c.l.s8.bf16 %v198_v8 }
  0xda   :  { %730 = vmatprep.subr.bf16.mxu1 %v318_v11  ;;  %v345_v11 = vunpack.c.l.s8.bf16 %v169_v3  ;;  %v470_v13 = vunpack.c.h.s8.bf16 %v230_v9  ;;  %v466_v19 = vunpack.c.l.s8.bf16 %v230_v9 }
  0xdc   :  { %688 = vmatpush1.bf16.msra.mxu0 %v253_v14  ;;  %v197_v14 = vld [vmem:[#allocation5 + $0x270] sm:$0xff] }
  0xdd   :  { %731 = vmatpush1.bf16.msra.mxu1 %v317_v15  ;;  %689 = vmatprep.subr.bf16.mxu0 %v250_v16  ;;  %v229_v15 = vld [vmem:[#allocation5 + $0x370] sm:$0xff]  ;;  %v405_v16 = vunpack.c.h.s8.bf16 %v197_v14 }
  0xde   :  { %732 = vmatprep.subr.bf16.mxu1 %v314_v17  ;;  %v469_v17 = vunpack.c.h.s8.bf16 %v229_v15 }
  0xe0   :  { %690 = vmatpush1.bf16.msra.mxu0 %v249_v20  ;;  %v194_v20 = vld [vmem:[#allocation5 + $0x258] sm:$0xff] }
  0xe1   :  { %733 = vmatpush1.bf16.msra.mxu1 %v313_v21  ;;  %691 = vmatprep.subr.bf16.mxu0 %v310_v22  ;;  %v226_v21 = vld [vmem:[#allocation5 + $0x358] sm:$0xff]  ;;  %v401_v22 = vunpack.c.l.s8.bf16 %v197_v14  ;;  %v398_v24 = vunpack.c.h.s8.bf16 %v194_v20 }
  0xe2   :  { %734 = vmatprep.subr.bf16.mxu1 %v374_v23  ;;  %v465_v23 = vunpack.c.l.s8.bf16 %v229_v15  ;;  %v462_v25 = vunpack.c.h.s8.bf16 %v226_v21 }
  0xe4   :  { %692 = vmatpush2.bf16.msra.mxu0 %v309_v26  ;;  %v193_v26 = vld [vmem:[#allocation5 + $0x250] sm:$0xff] }
  0xe5   :  { %735 = vmatpush2.bf16.msra.mxu1 %v373_v27  ;;  %693 = vmatprep.subr.bf16.mxu0 %v306_v28  ;;  %v225_v27 = vld [vmem:[#allocation5 + $0x350] sm:$0xff]  ;;  %v397_v28 = vunpack.c.h.s8.bf16 %v193_v26 }
  0xe6   :  { %736 = vmatprep.subr.bf16.mxu1 %v370_v29  ;;  %v458_v29 = vunpack.c.l.s8.bf16 %v226_v21 }
  0xe8   :  { %694 = vmatpush2.bf16.msra.mxu0 %v305_v32  ;;  %v393_v32 = vunpack.c.l.s8.bf16 %v193_v26 }
  0xe9   :  { %737 = vmatpush2.bf16.msra.mxu1 %v369_v33  ;;  %695 = vmatprep.subr.bf16.mxu0 %v302_v34  ;;  %v457_v33 = vunpack.c.l.s8.bf16 %v225_v27  ;;  %v390_v34 = vunpack.c.h.s8.bf16 %v190_v30 }
  0xea   :  { %738 = vmatprep.subr.bf16.mxu1 %v366_v35  ;;  %v189_v35 = vld [vmem:[#allocation5 + $0x230] sm:$0xff] }
  0xeb   :  { %v389_v40 = vunpack.c.h.s8.bf16 %v189_v35  ;;  %v385_v46 = vunpack.c.l.s8.bf16 %v189_v35 }
  0xec   :  { %696 = vmatpush2.bf16.msra.mxu0 %v301_v42  ;;  %v386_v42 = vunpack.c.l.s8.bf16 %v190_v30 }
  0xed   :  { %739 = vmatpush2.bf16.msra.mxu1 %v365_v43  ;;  %697 = vmatprep.subr.bf16.mxu0 %v298_v44  ;;  %v450_v43 = vunpack.c.l.s8.bf16 %v222_v31  ;;  %v186_v44 = vld [vmem:[#allocation5 + $0x218] sm:$0xff] }
  0xee   :  { %740 = vmatprep.subr.bf16.mxu1 %v362_v45  ;;  %v218_v45 = vld [vmem:[#allocation5 + $0x318] sm:$0xff] }
  0xf0   :  { %698 = vmatpush2.bf16.msra.mxu0 %v297_v48  ;;  %v382_v48 = vunpack.c.h.s8.bf16 %v186_v44 }
  0xf1   :  { %741 = vmatpush2.bf16.msra.mxu1 %v361_v49  ;;  %699 = vmatprep.subr.bf16.mxu0 %v294_v50  ;;  %v446_v49 = vunpack.c.h.s8.bf16 %v218_v45  ;;  %v185_v50 = vld [vmem:[#allocation5 + $0x210] sm:$0xff] }
  0xf2   :  { %742 = vmatprep.subr.bf16.mxu1 %v358_v53  ;;  %v217_v53 = vld [vmem:[#allocation5 + $0x310] sm:$0xff]  ;;  %v381_v54 = vunpack.c.h.s8.bf16 %v185_v50  ;;  %v377_v60 = vunpack.c.l.s8.bf16 %v185_v50 }
  0xf3   :  { %v445_v55 = vunpack.c.h.s8.bf16 %v217_v53  ;;  %v441_v61 = vunpack.c.l.s8.bf16 %v217_v53 }
  0xf4   :  { %700 = vmatpush2.bf16.msra.mxu0 %v293_v56  ;;  %v378_v56 = vunpack.c.l.s8.bf16 %v186_v44 }
  0xf5   :  { %743 = vmatpush2.bf16.msra.mxu1 %v357_v57  ;;  %701 = vmatprep.subr.bf16.mxu0 %v290_v58  ;;  %v442_v57 = vunpack.c.l.s8.bf16 %v218_v45  ;;  %v214_v58 = vld [vmem:[#allocation5 + $0x2f8] sm:$0xff] }
  0xf6   :  { %744 = vmatprep.subr.bf16.mxu1 %v354_v59  ;;  %v246_v59 = vld [vmem:[#allocation5 + $0x3f8] sm:$0xff] }
  0xf8   :  { %702 = vmatpush2.bf16.msra.mxu0 %v289_v0  ;;  %v438_v0 = vunpack.c.h.s8.bf16 %v214_v58 }
  0xf9   :  { %745 = vmatpush2.bf16.msra.mxu1 %v353_v38  ;;  %703 = vmatprep.subr.bf16.mxu0 %v286_v1  ;;  %v502_v38 = vunpack.c.h.s8.bf16 %v246_v59  ;;  %v213_v1 = vld [vmem:[#allocation5 + $0x2f0] sm:$0xff] }
  0xfa   :  { %746 = vmatprep.subr.bf16.mxu1 %v350_v39  ;;  %v245_v39 = vld [vmem:[#allocation5 + $0x3f0] sm:$0xff]  ;;  %v437_v2 = vunpack.c.h.s8.bf16 %v213_v1  ;;  %v433_v8 = vunpack.c.l.s8.bf16 %v213_v1  ;;  %v1068_v1 = vld [vmem:[#allocation7] sm:$0xff] }
  0xfb   :  { %v501_v3 = vunpack.c.h.s8.bf16 %v245_v39  ;;  %v497_v9 = vunpack.c.l.s8.bf16 %v245_v39  ;;  %v1136_v39 = vunpack.c.h.s8.bf16 %v1068_v1 }
  0xfc   :  { %704 = vmatpush2.bf16.msra.mxu0 %v285_v4  ;;  %v434_v4 = vunpack.c.l.s8.bf16 %v214_v58 }
  0xfd   :  { %747 = vmatpush2.bf16.msra.mxu1 %v349_v5  ;;  %705 = vmatprep.subr.bf16.mxu0 %v282_v6  ;;  %v498_v5 = vunpack.c.l.s8.bf16 %v246_v59  ;;  %v210_v6 = vld [vmem:[#allocation5 + $0x2d8] sm:$0xff] }
  0xfe   :  { %748 = vmatprep.subr.bf16.mxu1 %v346_v7  ;;  %v242_v7 = vld [vmem:[#allocation5 + $0x3d8] sm:$0xff] }
 0x100   :  { %706 = vmatpush2.bf16.msra.mxu0 %v281_v10  ;;  %v430_v10 = vunpack.c.h.s8.bf16 %v210_v6 }
 0x101   :  { %749 = vmatpush2.bf16.msra.mxu1 %v345_v11  ;;  %761 = vmatprep.subr.bf16.mxu0 %v406_v12  ;;  %v494_v11 = vunpack.c.h.s8.bf16 %v242_v7  ;;  %v209_v12 = vld [vmem:[#allocation5 + $0x2d0] sm:$0xff] }
 0x102   :  { %804 = vmatprep.subr.bf16.mxu1 %v470_v13  ;;  %v241_v13 = vld [vmem:[#allocation5 + $0x3d0] sm:$0xff]  ;;  %v429_v14 = vunpack.c.h.s8.bf16 %v209_v12 }
 0x103   :  { %708 = vmatmul.mubr.bf16.vlgmr.msra.gmra.mxu0 %v2092_v51  ;;  %v461_v51 = vunpack.c.h.s8.bf16 %v225_v27  ;;  %v493_v15 = vunpack.c.h.s8.bf16 %v241_v13  ;;  %v489_v21 = vunpack.c.l.s8.bf16 %v241_v13 }
 0x104   :  { %751 = vmatmul.mubr.bf16.vlgmr.msra.gmra.mxu1 %v2094_v52  ;;  %762 = vmatpush1.bf16.msra.mxu0 %v405_v16  ;;  %v394_v52 = vunpack.c.l.s8.bf16 %v194_v20  ;;  %v426_v16 = vunpack.c.l.s8.bf16 %v210_v6  ;;  %v425_v20 = vunpack.c.l.s8.bf16 %v209_v12  ;;  %v1096_v6 = vld [vmem:[#allocation7 + $0xe0] sm:$0xff] }
 0x105   :  { %805 = vmatpush1.bf16.msra.mxu1 %v469_v17  ;;  %763 = vmatprep.subr.bf16.mxu0 %v402_v18  ;;  %v490_v17 = vunpack.c.l.s8.bf16 %v242_v7  ;;  %v206_v18 = vld [vmem:[#allocation5 + $0x2b8] sm:$0xff]  ;;  %v1192_v7 = vunpack.c.h.s8.bf16 %v1096_v6  ;;  %v1092_v12 = vld [vmem:[#allocation7 + $0xc0] sm:$0xff] }
 0x106   :  { %806 = vmatprep.subr.bf16.mxu1 %v466_v19  ;;  %793 = vmatprep.mubr.bf16.mxu0 %v2096_v62  ;;  %v454_v62 = vunpack.c.h.s8.bf16 %v222_v31  ;;  %v238_v19 = vld [vmem:[#allocation5 + $0x3b8] sm:$0xff]  ;;  %v1184_v13 = vunpack.c.h.s8.bf16 %v1092_v12 }
 0x107   :  { %836 = vmatprep.mubr.bf16.mxu1 %v2098_v63  ;;  %v221_v63 = vld [vmem:[#allocation5 + $0x330] sm:$0xff] }
 0x108   :  { %764 = vmatpush1.bf16.msra.mxu0 %v401_v22  ;;  %v453_v41 = vunpack.c.h.s8.bf16 %v221_v63  ;;  %v449_v47 = vunpack.c.l.s8.bf16 %v221_v63  ;;  %v422_v22 = vunpack.c.h.s8.bf16 %v206_v18 }
 0x109   :  { %807 = vmatpush1.bf16.msra.mxu1 %v465_v23  ;;  %765 = vmatprep.subr.bf16.mxu0 %v398_v24  ;;  %v486_v23 = vunpack.c.h.s8.bf16 %v238_v19  ;;  %v205_v24 = vld [vmem:[#allocation5 + $0x2b0] sm:$0xff] }
 0x10a   :  { %808 = vmatprep.subr.bf16.mxu1 %v462_v25  ;;  %v237_v25 = vld [vmem:[#allocation5 + $0x3b0] sm:$0xff]  ;;  %v421_v26 = vunpack.c.h.s8.bf16 %v205_v24  ;;  %v417_v30 = vunpack.c.l.s8.bf16 %v205_v24 }
 0x10b   :  { %v485_v27 = vunpack.c.h.s8.bf16 %v237_v25  ;;  %v481_v31 = vunpack.c.l.s8.bf16 %v237_v25 }
 0x10c   :  { %766 = vmatpush1.bf16.msra.mxu0 %v397_v28  ;;  %v418_v28 = vunpack.c.l.s8.bf16 %v206_v18  ;;  %v1088_v18 = vld [vmem:[#allocation7 + $0xa0] sm:$0xff] }
 0x10d   :  { %809 = vmatpush1.bf16.msra.mxu1 %v461_v51  ;;  %767 = vmatprep.subr.bf16.mxu0 %v394_v52  ;;  %v482_v51 = vunpack.c.l.s8.bf16 %v238_v19  ;;  %v202_v52 = vld [vmem:[#allocation5 + $0x298] sm:$0xff]  ;;  %v1176_v19 = vunpack.c.h.s8.bf16 %v1088_v18 }
 0x10e   :  { %810 = vmatprep.subr.bf16.mxu1 %v458_v29  ;;  %v234_v29 = vld [vmem:[#allocation5 + $0x398] sm:$0xff] }
 0x110   :  { %768 = vmatpush1.bf16.msra.mxu0 %v393_v32  ;;  %v414_v32 = vunpack.c.h.s8.bf16 %v202_v52 }
 0x111   :  { %811 = vmatpush1.bf16.msra.mxu1 %v457_v33  ;;  %769 = vmatprep.subr.bf16.mxu0 %v390_v34  ;;  %v478_v33 = vunpack.c.h.s8.bf16 %v234_v29  ;;  %v201_v34 = vld [vmem:[#allocation5 + $0x290] sm:$0xff] }
 0x112   :  { %812 = vmatprep.subr.bf16.mxu1 %v454_v62  ;;  %v233_v62 = vld [vmem:[#allocation5 + $0x390] sm:$0xff]  ;;  %v413_v35 = vunpack.c.h.s8.bf16 %v201_v34 }
 0x113   :  { %v477_v63 = vunpack.c.h.s8.bf16 %v233_v62  ;;  %v473_v44 = vunpack.c.l.s8.bf16 %v233_v62 }
 0x114   :  { %770 = vmatpush1.bf16.msra.mxu0 %v389_v40  ;;  %v410_v40 = vunpack.c.l.s8.bf16 %v202_v52 }
 0x115   :  { %813 = vmatpush1.bf16.msra.mxu1 %v453_v41  ;;  %771 = vmatprep.subr.bf16.mxu0 %v386_v42  ;;  %v474_v41 = vunpack.c.l.s8.bf16 %v234_v29  ;;  %v1081_v42 = vld [vmem:[#allocation7 + $0x68] sm:$0xff] }
 0x116   :  { %814 = vmatprep.subr.bf16.mxu1 %v450_v43  ;;  %v409_v43 = vunpack.c.l.s8.bf16 %v201_v34  ;;  %v1161_v45 = vunpack.c.h.s8.bf16 %v1081_v42 }
 0x118   :  { %772 = vmatpush1.bf16.msra.mxu0 %v385_v46  ;;  %v1080_v46 = vld [vmem:[#allocation7 + $0x60] sm:$0xff] }
 0x119   :  { %815 = vmatpush1.bf16.msra.mxu1 %v449_v47  ;;  %773 = vmatprep.subr.bf16.mxu0 %v382_v48  ;;  %v1160_v47 = vunpack.c.h.s8.bf16 %v1080_v46  ;;  %v1157_v48 = vunpack.c.l.s8.bf16 %v1081_v42  ;;  %v1156_v50 = vunpack.c.l.s8.bf16 %v1080_v46  ;;  %v2131_v46 = vld [vmem:[#allocation10 + $0x8] sm:$0xff] }
 0x11a   :  { %816 = vmatprep.subr.bf16.mxu1 %v446_v49  ;;  %v1077_v49 = vld [vmem:[#allocation7 + $0x48] sm:$0xff] }
 0x11b   :  { %v1153_v53 = vunpack.c.h.s8.bf16 %v1077_v49 }
 0x11c   :  { %774 = vmatpush1.bf16.msra.mxu0 %v381_v54  ;;  %v1076_v54 = vld [vmem:[#allocation7 + $0x40] sm:$0xff] }
 0x11d   :  { %817 = vmatpush1.bf16.msra.mxu1 %v445_v55  ;;  %775 = vmatprep.subr.bf16.mxu0 %v378_v56  ;;  %v1152_v55 = vunpack.c.h.s8.bf16 %v1076_v54  ;;  %v1149_v56 = vunpack.c.l.s8.bf16 %v1077_v49  ;;  %v1148_v58 = vunpack.c.l.s8.bf16 %v1076_v54 }
 0x11e   :  { %818 = vmatprep.subr.bf16.mxu1 %v442_v57  ;;  %v1073_v57 = vld [vmem:[#allocation7 + $0x28] sm:$0xff] }
 0x11f   :  { %v1145_v59 = vunpack.c.h.s8.bf16 %v1073_v57 }
 0x120   :  { %776 = vmatpush1.bf16.msra.mxu0 %v377_v60  ;;  %v1072_v60 = vld [vmem:[#allocation7 + $0x20] sm:$0xff] }
 0x121   :  { %819 = vmatpush1.bf16.msra.mxu1 %v441_v61  ;;  %777 = vmatprep.subr.bf16.mxu0 %v438_v0  ;;  %v1144_v61 = vunpack.c.h.s8.bf16 %v1072_v60  ;;  %v1140_v0 = vunpack.c.l.s8.bf16 %v1072_v60 }
 0x122   :  { %820 = vmatprep.subr.bf16.mxu1 %v502_v38 }
 0x124   :  { %778 = vmatpush2.bf16.msra.mxu0 %v437_v2 }
 0x125   :  { %821 = vmatpush2.bf16.msra.mxu1 %v501_v3  ;;  %779 = vmatprep.subr.bf16.mxu0 %v434_v4  ;;  %v1097_v3 = vld [vmem:[#allocation7 + $0xe8] sm:$0xff]  ;;  %v1132_v4 = vunpack.c.l.s8.bf16 %v1068_v1 }
 0x126   :  { %822 = vmatprep.subr.bf16.mxu1 %v498_v5  ;;  %v1193_v5 = vunpack.c.h.s8.bf16 %v1097_v3 }
 0x128   :  { %780 = vmatpush2.bf16.msra.mxu0 %v433_v8  ;;  %v1189_v8 = vunpack.c.l.s8.bf16 %v1097_v3 }
 0x129   :  { %823 = vmatpush2.bf16.msra.mxu1 %v497_v9  ;;  %781 = vmatprep.subr.bf16.mxu0 %v430_v10  ;;  %v1093_v9 = vld [vmem:[#allocation7 + $0xc8] sm:$0xff]  ;;  %v1188_v10 = vunpack.c.l.s8.bf16 %v1096_v6 }
 0x12a   :  { %824 = vmatprep.subr.bf16.mxu1 %v494_v11  ;;  %v1185_v11 = vunpack.c.h.s8.bf16 %v1093_v9 }
 0x12c   :  { %782 = vmatpush2.bf16.msra.mxu0 %v429_v14  ;;  %v1181_v14 = vunpack.c.l.s8.bf16 %v1093_v9 }
 0x12d   :  { %825 = vmatpush2.bf16.msra.mxu1 %v493_v15  ;;  %783 = vmatprep.subr.bf16.mxu0 %v426_v16  ;;  %v1089_v15 = vld [vmem:[#allocation7 + $0xa8] sm:$0xff]  ;;  %v1180_v16 = vunpack.c.l.s8.bf16 %v1092_v12 }
 0x12e   :  { %826 = vmatprep.subr.bf16.mxu1 %v490_v17  ;;  %v1177_v17 = vunpack.c.h.s8.bf16 %v1089_v15 }
 0x130   :  { %784 = vmatpush2.bf16.msra.mxu0 %v425_v20  ;;  %v1173_v20 = vunpack.c.l.s8.bf16 %v1089_v15 }
 0x131   :  { %827 = vmatpush2.bf16.msra.mxu1 %v489_v21  ;;  %785 = vmatprep.subr.bf16.mxu0 %v422_v22  ;;  %v1085_v21 = vld [vmem:[#allocation7 + $0x88] sm:$0xff]  ;;  %v1172_v22 = vunpack.c.l.s8.bf16 %v1088_v18 }
 0x132   :  { %828 = vmatprep.subr.bf16.mxu1 %v486_v23  ;;  %v1169_v25 = vunpack.c.h.s8.bf16 %v1085_v21  ;;  %v1165_v29 = vunpack.c.l.s8.bf16 %v1085_v21 }
 0x134   :  { %786 = vmatpush2.bf16.msra.mxu0 %v421_v26  ;;  %v1084_v26 = vld [vmem:[#allocation7 + $0x80] sm:$0xff] }
 0x135   :  { %829 = vmatpush2.bf16.msra.mxu1 %v485_v27  ;;  %787 = vmatprep.subr.bf16.mxu0 %v418_v28  ;;  %v847_v27 = vlaneseq  ;;  %v1168_v28 = vunpack.c.h.s8.bf16 %v1084_v26 }
 0x136   :  { %830 = vmatprep.subr.bf16.mxu1 %v482_v51 }
 0x138   :  { %788 = vmatpush2.bf16.msra.mxu0 %v417_v30  ;;  %v2118_v30 = vld [vmem:[#allocation7 + $0x78] sm:$0xff] }
 0x139   :  { %831 = vmatpush2.bf16.msra.mxu1 %v481_v31  ;;  %789 = vmatprep.subr.bf16.mxu0 %v414_v32  ;;  %v2120_v31 = vshrl.u32 %v847_v27, 7  ;;  %v1164_v32 = vunpack.c.l.s8.bf16 %v1084_v26  ;;  %v1163_v62 = vunpack.c.h.s8.bf16 %v2118_v30 }
 0x13a   :  { %832 = vmatprep.subr.bf16.mxu1 %v478_v33 }
 0x13b   :  { %v2129_v42 = vsub.s32 0, %v2120_v31 }
 0x13c   :  { %790 = vmatpush2.bf16.msra.mxu0 %v413_v35  ;;  %v2124_v35 = vsub.s32 3, %v2120_v31 }
 0x13d   :  { %833 = vmatpush2.bf16.msra.mxu1 %v477_v63  ;;  %791 = vmatprep.subr.bf16.mxu0 %v410_v40 }
 0x13e   :  { %834 = vmatprep.subr.bf16.mxu1 %v474_v41  ;;  %v2126_v41 = vld [vmem:[#allocation10] sm:$0xff] }
 0x13f   :  { %v850_v49 = vrot.slane %v2126_v41, %v2124_v35 }
 0x140   :  { %792 = vmatpush2.bf16.msra.mxu0 %v409_v43 }
 0x141   :  { %835 = vmatpush2.bf16.msra.mxu1 %v473_v44  ;;  %1260 = vmatprep.subr.bf16.mxu0 %v1161_v45 }
 0x143   :  { %794 = vmatmul.mubr.bf16.vlgmr.msra.gmra.mxu0 %v2104_v36  ;;  %v1141_v36 = vunpack.c.l.s8.bf16 %v1073_v57  ;;  %v537_v23 = vpop.f32.mrf.mxu0 }
 0x144   :  { %837 = vmatmul.mubr.bf16.vlgmr.msra.gmra.mxu1 %v2106_v37  ;;  %1261 = vmatpush1.bf16.msra.mxu0 %v1160_v47  ;;  %v1069_v37 = vld [vmem:[#allocation7 + $0x8] sm:$0xff]  ;;  %v580_v24 = vpop.f32.mrf.mxu1 }
 0x145   :  { %1262 = vmatprep.subr.bf16.mxu0 %v1157_v48  ;;  %v1137_v38 = vunpack.c.h.s8.bf16 %v1069_v37  ;;  %v1133_v2 = vunpack.c.l.s8.bf16 %v1069_v37  ;;  %v539_v51 = vpop.f32.mrf.mxu0  ;;  %v581_v43 = vadd.f32 %v580_v24, %v537_v23 }
 0x146   :  { %v582_v52 = vpop.f32.mrf.mxu1 }
 0x147   :  { %v541_v33 = vpop.f32.mrf.mxu0  ;;  %v583_v47 = vadd.f32 %v582_v52, %v539_v51 }
 0x148   :  { %1263 = vmatpush1.bf16.msra.mxu0 %v1156_v50  ;;  %v584_v34 = vpop.f32.mrf.mxu1  ;;  %v874_v50 = vrot.slane %v2126_v41, %v2129_v42 }
 0x149   :  { %1264 = vmatprep.subr.bf16.mxu0 %v1153_v53  ;;  %v543_v63 = vpop.f32.mrf.mxu0 }
 0x14a   :  { %v586_v40 = vpop.f32.mrf.mxu1 }
 0x14b   :  { %v587_v60 = vadd.f32 %v586_v40, %v543_v63 }
 0x14c   :  { %1265 = vmatpush1.bf16.msra.mxu0 %v1152_v55  ;;  %v585_v55 = vadd.f32 %v584_v34, %v541_v33  ;;  %v1108_v34 = vld [vmem:[#allocation7 + $0x140] sm:$0xff] }
 0x14d   :  { %1266 = vmatprep.subr.bf16.mxu0 %v1149_v56  ;;  %v1216_v63 = vunpack.c.h.s8.bf16 %v1108_v34 }
 0x150   :  { %1267 = vmatpush1.bf16.msra.mxu0 %v1148_v58  ;;  %v854_v58 = vrot.slane %v2131_v46, %v2124_v35 }
 0x151   :  { %1268 = vmatprep.subr.bf16.mxu0 %v1145_v59 }
 0x154   :  { %1269 = vmatpush1.bf16.msra.mxu0 %v1144_v61 }
 0x155   :  { %1270 = vmatprep.subr.bf16.mxu0 %v1141_v36 }
 0x158   :  { %1271 = vmatpush1.bf16.msra.mxu0 %v1140_v0 }
 0x159   :  { %1272 = vmatprep.subr.bf16.mxu0 %v1137_v38  ;;  %v878_v38 = vrot.slane %v2131_v46, %v2129_v42 }
 0x15c   :  { %1273 = vmatpush1.bf16.msra.mxu0 %v1136_v39 }
 0x15d   :  { %1274 = vmatprep.subr.bf16.mxu0 %v1133_v2 }
 0x160   :  { %1275 = vmatpush1.bf16.msra.mxu0 %v1132_v4 }
 0x161   :  { %1276 = vmatprep.subr.bf16.mxu0 %v1193_v5 }
 0x164   :  { %1277 = vmatpush2.bf16.msra.mxu0 %v1192_v7 }
 0x165   :  { %1278 = vmatprep.subr.bf16.mxu0 %v1189_v8 }
 0x168   :  { %1279 = vmatpush2.bf16.msra.mxu0 %v1188_v10 }
 0x169   :  { %1280 = vmatprep.subr.bf16.mxu0 %v1185_v11 }
 0x16c   :  { %1281 = vmatpush2.bf16.msra.mxu0 %v1184_v13  ;;  %v1113_v13 = vld [vmem:[#allocation7 + $0x168] sm:$0xff] }
 0x16d   :  { %1282 = vmatprep.subr.bf16.mxu0 %v1181_v14  ;;  %v1221_v26 = vunpack.c.l.s8.bf16 %v1113_v13 }
 0x170   :  { %1283 = vmatpush2.bf16.msra.mxu0 %v1180_v16  ;;  %v1225_v16 = vunpack.c.h.s8.bf16 %v1113_v13 }
 0x171   :  { %1284 = vmatprep.subr.bf16.mxu0 %v1177_v17  ;;  %v1112_v17 = vld [vmem:[#allocation7 + $0x160] sm:$0xff] }
 0x172   :  { %1303 = vmatprep.subr.bf16.mxu1 %v1225_v16 }
 0x174   :  { %1285 = vmatpush2.bf16.msra.mxu0 %v1176_v19 }
 0x175   :  { %1286 = vmatprep.subr.bf16.mxu0 %v1173_v20  ;;  %v1224_v20 = vunpack.c.h.s8.bf16 %v1112_v17 }
 0x177   :  { %1304 = vmatpush1.bf16.msra.mxu1 %v1224_v20 }
 0x178   :  { %1287 = vmatpush2.bf16.msra.mxu0 %v1172_v22  ;;  %1305 = vmatprep.subr.bf16.mxu1 %v1221_v26 }
 0x179   :  { %1288 = vmatprep.subr.bf16.mxu0 %v1169_v25 }
 0x17c   :  { %1289 = vmatpush2.bf16.msra.mxu0 %v1168_v28  ;;  %v1220_v28 = vunpack.c.l.s8.bf16 %v1112_v17 }
 0x17d   :  { %1290 = vmatprep.subr.bf16.mxu0 %v1165_v29  ;;  %v1109_v29 = vld [vmem:[#allocation7 + $0x148] sm:$0xff] }
 0x17e   :  { %1306 = vmatpush1.bf16.msra.mxu1 %v1220_v28  ;;  %v1217_v33 = vunpack.c.h.s8.bf16 %v1109_v29 }
 0x180   :  { %1291 = vmatpush2.bf16.msra.mxu0 %v1164_v32  ;;  %1307 = vmatprep.subr.bf16.mxu1 %v1217_v33  ;;  %v1125_v33 = vld [vmem:[#allocation7 + $0x1c8] sm:$0xff] }
 0x181   :  { %1346 = vmatprep.subr.bf16.mxu0 %v1163_v62 }
 0x182   :  { %1308 = vmatpush1.bf16.msra.mxu1 %v1216_v63 }
 0x183   :  { %v623_v44 = vpop.f32.mrf.mxu0 }
 0x184   :  { %v666_v45 = vpop.f32.mrf.mxu1  ;;  %v624_v48 = vadd.f32 %v623_v44, %v581_v43 }
 0x185   :  { %v625_v53 = vpop.f32.mrf.mxu0 }
 0x186   :  { %v668_v54 = vpop.f32.mrf.mxu1  ;;  %v667_v56 = vadd.f32 %v666_v45, %v624_v48  ;;  %v626_v57 = vadd.f32 %v625_v53, %v583_v47  ;;  %v1213_v45 = vunpack.c.l.s8.bf16 %v1109_v29  ;;  %v1212_v48 = vunpack.c.l.s8.bf16 %v1108_v34  ;;  %v1105_v53 = vld [vmem:[#allocation7 + $0x128] sm:$0xff] }
 0x187   :  { %v627_v59 = vpop.f32.mrf.mxu0  ;;  %v1249_v34 = vunpack.c.h.s8.bf16 %v1125_v33 }
 0x188   :  { %v863_v61 = vmul.f32 %v850_v49, %v667_v56  ;;  %v669_v36 = vadd.f32 %v668_v54, %v626_v57  ;;  %v628_v37 = vadd.f32 %v627_v59, %v585_v55  ;;  %v670_v0 = vpop.f32.mrf.mxu1  ;;  %1309 = vmatprep.subr.bf16.mxu1 %v1213_v45  ;;  %v1209_v55 = vunpack.c.h.s8.bf16 %v1105_v53  ;;  %v1104_v56 = vld [vmem:[#allocation7 + $0x120] sm:$0xff]  ;;  %v1121_v45 = vld [vmem:[#allocation7 + $0x1a8] sm:$0xff] }
 0x189   :  { %v629_v1 = vpop.f32.mrf.mxu0  ;;  %1310 = vmatpush1.bf16.msra.mxu1 %v1212_v48  ;;  %v1241_v48 = vunpack.c.h.s8.bf16 %v1121_v45 }
 0x18a   :  { %v887_v39 = vadd.f32 %v874_v50, %v863_v61  ;;  %v864_v2 = vmul.f32 %v854_v58, %v669_v36  ;;  %v671_v3 = vadd.f32 %v670_v0, %v628_v37  ;;  %v630_v4 = vadd.f32 %v629_v1, %v587_v60  ;;  %v672_v6 = vpop.f32.mrf.mxu1  ;;  %1311 = vmatprep.subr.bf16.mxu1 %v1209_v55 }
 0x18b   :  { %v1205_v0 = vunpack.c.l.s8.bf16 %v1105_v53  ;;  %v2161_v53 = vsub.s32 2, %v2120_v31  ;;  %v1237_v55 = vunpack.c.l.s8.bf16 %v1121_v45 }
 0x18c   :  { %v867_v5 = vmul.f32 %v850_v49, %v671_v3  ;;  %v888_v7 = vadd.f32 %v878_v38, %v864_v2  ;;  %v673_v8 = vadd.f32 %v672_v6, %v630_v4  ;;  %v903_v9 = vmul.f32 0.2, %v887_v39 }
 0x18d   :  { %vm895_vm0 = vcmp.gt.f32.partialorder %v887_v39, 0.0 }
 0x18e   :  { %v891_v10 = vadd.f32 %v874_v50, %v867_v5  ;;  %v868_v11 = vmul.f32 %v854_v58, %v673_v8  ;;  %v904_v14 = vmul.f32 0.2, %v888_v7  ;;  %v911_v18 = vsel %vm895_vm0, %v887_v39, %v903_v9  ;;  %v1101_v5 = vld [vmem:[#allocation7 + $0x108] sm:$0xff]  ;;  %v1100_v8 = vld [vmem:[#allocation7 + $0x100] sm:$0xff] }
 0x18f   :  { %vm896_vm2 = vcmp.gt.f32.partialorder %v888_v7, 0.0  ;;  %v1208_v58 = vunpack.c.h.s8.bf16 %v1104_v56  ;;  %v1204_v39 = vunpack.c.l.s8.bf16 %v1104_v56  ;;  %v1196_v16 = vunpack.c.l.s8.bf16 %v1100_v8 }
 0x190   :  { %vm899_vm1 = vcmp.gt.f32.partialorder %v891_v10, 0.0  ;;  %v907_v12 = vmul.f32 0.2, %v891_v10  ;;  %v892_v15 = vadd.f32 %v878_v38, %v868_v11  ;;  %v912_v23 = vsel %vm896_vm2, %v888_v7, %v904_v14 }
 0x191   :  { %1312 = vmatpush1.bf16.msra.mxu1 %v1208_v58  ;;  %v1201_v7 = vunpack.c.h.s8.bf16 %v1101_v5  ;;  %v1197_v14 = vunpack.c.l.s8.bf16 %v1101_v5 }
 0x192   :  { %v915_v19 = vsel %vm899_vm1, %v891_v10, %v907_v12  ;;  %vm900_vm3 = vcmp.gt.f32.partialorder %v892_v15, 0.0  ;;  %v908_v22 = vmul.f32 0.2, %v892_v15  ;;  %1313 = vmatprep.subr.bf16.mxu1 %v1205_v0  ;;  %v1200_v10 = vunpack.c.h.s8.bf16 %v1100_v8 }
 0x193   :  { %v919_v21 = vadd.f32 %v915_v19, %v911_v18  ;;  %v1047_v8 = vrot.slane %v2131_v46, %v2161_v53 }
 0x194   :  { %v916_v25 = vsel %vm900_vm3, %v892_v15, %v908_v22  ;;  %v1128_v22 = vld [vmem:[#allocation7 + $0x1e0] sm:$0xff] }
 0x195   :  { %v920_v24 = vrot.slane %v919_v21, 4  ;;  %v926_v27 = vadd.f32 %v916_v25, %v912_v23  ;;  %1314 = vmatpush1.bf16.msra.mxu1 %v1204_v39 }
 0x196   :  { %1315 = vmatprep.subr.bf16.mxu1 %v1201_v7 }
 0x197   :  { %v921_v51 = vadd.f32 %v920_v24, %v919_v21  ;;  %v927_v52 = vrot.slane %v926_v27, 4  ;;  %v1256_v24 = vunpack.c.h.s8.bf16 %v1128_v22 }
 0x199   :  { %v922_v32 = vrot.slane %v921_v51, 2  ;;  %v928_v62 = vadd.f32 %v927_v52, %v926_v27  ;;  %1316 = vmatpush1.bf16.msra.mxu1 %v1200_v10  ;;  %v1252_v52 = vunpack.c.l.s8.bf16 %v1128_v22  ;;  %v1078_v22 = vld [vmem:[#allocation7 + $0x50] sm:$0xff] }
 0x19a   :  { %1317 = vmatprep.subr.bf16.mxu1 %v1197_v14  ;;  %v1082_v14 = vld [vmem:[#allocation7 + $0x70] sm:$0xff] }
 0x19b   :  { %v923_v40 = vadd.f32 %v922_v32, %v921_v51  ;;  %v929_v43 = vrot.slane %v928_v62, 2 }
 0x19d   :  { %v924_v44 = vrot.slane %v923_v40, 1  ;;  %v930_v47 = vadd.f32 %v929_v43, %v928_v62  ;;  %1318 = vmatpush1.bf16.msra.mxu1 %v1196_v16  ;;  %v1124_v62 = vld [vmem:[#allocation7 + $0x1c0] sm:$0xff]  ;;  %v1245_v43 = vunpack.c.l.s8.bf16 %v1125_v33  ;;  %v1070_v33 = vld [vmem:[#allocation7 + $0x10] sm:$0xff] }
 0x19f   :  { %v925_v49 = vadd.f32 %v924_v44, %v923_v40  ;;  %v931_v50 = vrot.slane %v930_v47, 1  ;;  %v1248_v40 = vunpack.c.h.s8.bf16 %v1124_v62  ;;  %v1244_v44 = vunpack.c.l.s8.bf16 %v1124_v62 }
 0x1a1   :  { %v948_v54 = vmul.f32 0.0625, %v925_v49  ;;  %v932_v57 = vadd.f32 %v931_v50, %v930_v47  ;;  %v2158_v47 = vsub.s32 1, %v2120_v31  ;;  %v1120_v49 = vld [vmem:[#allocation7 + $0x1a0] sm:$0xff] }
 0x1a2   :  { %v1240_v50 = vunpack.c.h.s8.bf16 %v1120_v49 }
 0x1a3   :  { %v2141_v59 = vsub.f32 %v911_v18, %v948_v54  ;;  %v2143_v60 = vsub.f32 %v915_v19, %v948_v54  ;;  %v949_v61 = vmul.f32 0.0625, %v932_v57  ;;  %v1129_v19 = vld [vmem:[#allocation7 + $0x1e8] sm:$0xff]  ;;  %v1019_v54 = vrot.slane %v2126_v41, %v2158_v47 }
 0x1a4   :  { %v1257_v21 = vunpack.c.h.s8.bf16 %v1129_v19  ;;  %v1253_v28 = vunpack.c.l.s8.bf16 %v1129_v19  ;;  %v1236_v57 = vunpack.c.l.s8.bf16 %v1120_v49  ;;  %v1023_v0 = vrot.slane %v2131_v46, %v2158_v47  ;;  %v1079_v19 = vld [vmem:[#allocation7 + $0x58] sm:$0xff] }
 0x1a5   :  { %v960_v36 = vmul.f32 %v2141_v59, %v2141_v59  ;;  %v964_v37 = vmul.f32 %v2143_v60, %v2143_v60  ;;  %v2149_v38 = vsub.f32 %v916_v25, %v949_v61  ;;  %v2151_v1 = vsub.f32 %v912_v23, %v949_v61  ;;  %v1095_v49 = vld [vmem:[#allocation7 + $0xd8] sm:$0xff] }
 0x1a6   :  { %1319 = vmatprep.subr.bf16.mxu1 %v1257_v21  ;;  %v1159_v46 = vunpack.c.l.s8.bf16 %v2118_v30  ;;  %v1155_v21 = vunpack.c.h.s8.bf16 %v1079_v19  ;;  %v1150_v30 = vunpack.c.l.s8.bf16 %v1078_v22 }
 0x1a7   :  { %v968_v2 = vadd.f32 %v964_v37, %v960_v36  ;;  %v965_v3 = vmul.f32 %v2149_v38, %v2149_v38  ;;  %v961_v4 = vmul.f32 %v2151_v1, %v2151_v1  ;;  %1320 = vmatpush2.bf16.msra.mxu1 %v1256_v24  ;;  %v1117_v36 = vld [vmem:[#allocation7 + $0x188] sm:$0xff]  ;;  %v1116_v37 = vld [vmem:[#allocation7 + $0x180] sm:$0xff]  ;;  %v1151_v24 = vunpack.c.l.s8.bf16 %v1079_v19 }
 0x1a8   :  { %1321 = vmatprep.subr.bf16.mxu1 %v1253_v28  ;;  %v1233_v39 = vunpack.c.h.s8.bf16 %v1117_v36  ;;  %v1229_v7 = vunpack.c.l.s8.bf16 %v1117_v36 }
 0x1a9   :  { %v969_v6 = vrot.slane %v968_v2, 4  ;;  %v975_v9 = vadd.f32 %v965_v3, %v961_v4 }
 0x1ab   :  { %v970_v11 = vadd.f32 %v969_v6, %v968_v2  ;;  %v976_v12 = vrot.slane %v975_v9, 4  ;;  %1322 = vmatpush2.bf16.msra.mxu1 %v1252_v52  ;;  %v1232_v2 = vunpack.c.h.s8.bf16 %v1116_v37  ;;  %v1043_v6 = vrot.slane %v2126_v41, %v2161_v53  ;;  %v1071_v52 = vld [vmem:[#allocation7 + $0x18] sm:$0xff] }
 0x1ac   :  { %1323 = vmatprep.subr.bf16.mxu1 %v1249_v34  ;;  %v1138_v34 = vunpack.c.h.s8.bf16 %v1070_v33  ;;  %v1135_v62 = vunpack.c.l.s8.bf16 %v1071_v52 }
 0x1ad   :  { %v971_v13 = vrot.slane %v970_v11, 2  ;;  %v977_v15 = vadd.f32 %v976_v12, %v975_v9 }
 0x1af   :  { %v972_v17 = vadd.f32 %v971_v13, %v970_v11  ;;  %v978_v18 = vrot.slane %v977_v15, 2  ;;  %1324 = vmatpush2.bf16.msra.mxu1 %v1248_v40  ;;  %v1228_v11 = vunpack.c.l.s8.bf16 %v1116_v37  ;;  %v1134_v40 = vunpack.c.l.s8.bf16 %v1070_v33 }
 0x1b0   :  { %1325 = vmatprep.subr.bf16.mxu1 %v1245_v43  ;;  %v1183_v37 = vunpack.c.l.s8.bf16 %v1095_v49 }
 0x1b1   :  { %v973_v20 = vrot.slane %v972_v17, 1  ;;  %v979_v23 = vadd.f32 %v978_v18, %v977_v15 }
 0x1b3   :  { %v974_v25 = vadd.f32 %v973_v20, %v972_v17  ;;  %v980_v26 = vrot.slane %v979_v23, 1  ;;  %1326 = vmatpush2.bf16.msra.mxu1 %v1244_v44  ;;  %v1162_v17 = vunpack.c.h.s8.bf16 %v1082_v14  ;;  %v1158_v20 = vunpack.c.l.s8.bf16 %v1082_v14  ;;  %v1098_v44 = vld [vmem:[#allocation7 + $0xf0] sm:$0xff] }
 0x1b4   :  { %1327 = vmatprep.subr.bf16.mxu1 %v1241_v48  ;;  %v1194_v45 = vunpack.c.h.s8.bf16 %v1098_v44 }
 0x1b5   :  { %v996_v27 = vmul.f32 0.0625, %v974_v25  ;;  %v981_v51 = vadd.f32 %v980_v26, %v979_v23  ;;  %v1154_v23 = vunpack.c.h.s8.bf16 %v1078_v22  ;;  %v1075_v25 = vld [vmem:[#allocation7 + $0x38] sm:$0xff] }
 0x1b6   :  { %v1147_v26 = vunpack.c.h.s8.bf16 %v1075_v25 }
 0x1b7   :  { %v1000_v29 = vadd.f32 0.8, %v996_v27  ;;  %v997_v32 = vmul.f32 0.0625, %v981_v51  ;;  %1328 = vmatpush2.bf16.msra.mxu1 %v1240_v50  ;;  %v1074_v27 = vld [vmem:[#allocation7 + $0x30] sm:$0xff]  ;;  %v1143_v51 = vunpack.c.l.s8.bf16 %v1075_v25  ;;  %v1190_v50 = vunpack.c.l.s8.bf16 %v1098_v44 }
 0x1b8   :  { %1329 = vmatprep.subr.bf16.mxu1 %v1237_v55  ;;  %v1146_v28 = vunpack.c.h.s8.bf16 %v1074_v27 }
 0x1b9   :  { %1871 = vrsqrt.f32 %v1000_v29  ;;  %v1001_v63 = vadd.f32 0.8, %v997_v32  ;;  %v1142_v29 = vunpack.c.l.s8.bf16 %v1074_v27  ;;  %v1139_v32 = vunpack.c.h.s8.bf16 %v1071_v52 }
 0x1bb   :  { %1873 = vrsqrt.f32 %v1001_v63  ;;  %1330 = vmatpush2.bf16.msra.mxu1 %v1236_v57  ;;  %v1099_v63 = vld [vmem:[#allocation7 + $0xf8] sm:$0xff]  ;;  %v1094_v57 = vld [vmem:[#allocation7 + $0xd0] sm:$0xff] }
 0x1bc   :  { %1331 = vmatprep.subr.bf16.mxu1 %v1233_v39  ;;  %v1195_v43 = vunpack.c.h.s8.bf16 %v1099_v63  ;;  %v1191_v48 = vunpack.c.l.s8.bf16 %v1099_v63  ;;  %v1182_v39 = vunpack.c.l.s8.bf16 %v1094_v57 }
 0x1bf   :  { %1332 = vmatpush2.bf16.msra.mxu1 %v1232_v2 }
 0x1c0   :  { %1333 = vmatprep.subr.bf16.mxu1 %v1229_v7 }
 0x1c3   :  { %1334 = vmatpush2.bf16.msra.mxu1 %v1228_v11 }
 0x1c4   :  { %v752_v55 = vpop.f32.mrf.mxu1 }
 0x1c6   :  { %v1872_v56 = vpop.eup %1871  ;;  %v754_v36 = vpop.f32.mrf.mxu1 }
 0x1c7   :  { %v1012_v58 = vmul.f32 %v1872_v56, %v2143_v60  ;;  %v1008_v61 = vmul.f32 %v1872_v56, %v2141_v59  ;;  %v1187_v56 = vunpack.c.h.s8.bf16 %v1095_v49 }
 0x1c8   :  { %v1874_v3 = vpop.eup %1873 }
 0x1c9   :  { %v1032_v4 = vmul.f32 %v1019_v54, %v1008_v61  ;;  %v1036_v5 = vmul.f32 %v1019_v54, %v1012_v58  ;;  %v1009_v60 = vmul.f32 %v1874_v3, %v2151_v1  ;;  %v1013_v59 = vmul.f32 %v1874_v3, %v2149_v38  ;;  %v2175_v1 = vld [vmem:[#allocation7 + $0x178] sm:$0xff]  ;;  %v709_v54 = vpop.f32.mrf.mxu0  ;;  %v756_v3 = vpop.f32.mrf.mxu1 }
 0x1ca   :  { %v1227_v18 = vunpack.c.h.s8.bf16 %v2175_v1  ;;  %v1186_v58 = vunpack.c.h.s8.bf16 %v1094_v57 }
 0x1cb   :  { %v1033_v9 = vmul.f32 %v1023_v0, %v1009_v60  ;;  %v1037_v10 = vmul.f32 %v1023_v0, %v1013_v59  ;;  %v1056_v12 = vadd.f32 %v1043_v6, %v1032_v4  ;;  %v1060_v13 = vadd.f32 %v1043_v6, %v1036_v5  ;;  %v711_v61 = vpop.f32.mrf.mxu0  ;;  %v1091_v0 = vld [vmem:[#allocation7 + $0xb8] sm:$0xff]  ;;  %v1090_v5 = vld [vmem:[#allocation7 + $0xb0] sm:$0xff]  ;;  %v758_v60 = vpop.f32.mrf.mxu1 }
 0x1cc   :  { %1389 = vmatprep.subr.bf16.mxu1 %v1227_v18  ;;  %v1179_v4 = vunpack.c.h.s8.bf16 %v1091_v0  ;;  %v1178_v6 = vunpack.c.h.s8.bf16 %v1090_v5  ;;  %v2182_v59 = vld [vmem:[#allocation10 + $0x10] sm:$0xff]  ;;  %v755_v14 = vadd.f32 %v754_v36, %v711_v61 }
 0x1cd   :  { %v1057_v15 = vadd.f32 %v1047_v8, %v1033_v9  ;;  %v1061_v16 = vadd.f32 %v1047_v8, %v1037_v10  ;;  %v2177_v38 = vpack.c.bf16 %v1060_v13, %v1056_v12  ;;  %v713_v2 = vpop.f32.mrf.mxu0  ;;  %v1175_v8 = vunpack.c.l.s8.bf16 %v1091_v0  ;;  %v1087_v10 = vld [vmem:[#allocation7 + $0x98] sm:$0xff] }
 0x1ce   :  { %v753_v9 = vadd.f32 %v752_v55, %v709_v54  ;;  %v2184_v13 = vld [vmem:[#allocation10 + $0x18] sm:$0xff]  ;;  %v1167_v33 = vunpack.c.l.s8.bf16 %v1087_v10 }
 0x1cf   :  { %v1065_v41 = vpack.c.bf16 %v1061_v16, %v1057_v15  ;;  %v715_v7 = vpop.f32.mrf.mxu0  ;;  %v858_v16 = vrot.slane %v2182_v59, %v2124_v35 }
 0x1d1   :  { %1292 = vmatprep.mubr.bf16.mxu0 %v1065_v41 }
 0x1d2   :  { %1293 = vmatmul.mubr.bf16.vlgmr.msra.gmra.mxu0 %v2177_v38 }
 0x1d3   :  { %1347 = vmatpush1.bf16.msra.mxu0 %v1162_v17  ;;  %1378 = vmatprep.mubr.bf16.mxu0 %v1065_v41  ;;  %v1174_v41 = vunpack.c.l.s8.bf16 %v1090_v5  ;;  %v1086_v17 = vld [vmem:[#allocation7 + $0x90] sm:$0xff] }
 0x1d4   :  { %1348 = vmatprep.subr.bf16.mxu0 %v1159_v46  ;;  %v882_v46 = vrot.slane %v2182_v59, %v2129_v42  ;;  %v1166_v44 = vunpack.c.l.s8.bf16 %v1086_v17 }
 0x1d7   :  { %1349 = vmatpush1.bf16.msra.mxu0 %v1158_v20  ;;  %v1171_v20 = vunpack.c.h.s8.bf16 %v1087_v10 }
 0x1d8   :  { %1350 = vmatprep.subr.bf16.mxu0 %v1155_v21  ;;  %v757_v21 = vadd.f32 %v756_v3, %v713_v2 }
 0x1db   :  { %1351 = vmatpush1.bf16.msra.mxu0 %v1154_v23 }
 0x1dc   :  { %1352 = vmatprep.subr.bf16.mxu0 %v1151_v24  ;;  %v862_v24 = vrot.slane %v2184_v13, %v2124_v35 }
 0x1df   :  { %1353 = vmatpush1.bf16.msra.mxu0 %v1150_v30  ;;  %v1170_v30 = vunpack.c.h.s8.bf16 %v1086_v17 }
 0x1e0   :  { %1354 = vmatprep.subr.bf16.mxu0 %v1147_v26  ;;  %v759_v26 = vadd.f32 %v758_v60, %v715_v7 }
 0x1e3   :  { %1355 = vmatpush1.bf16.msra.mxu0 %v1146_v28 }
 0x1e4   :  { %1356 = vmatprep.subr.bf16.mxu0 %v1143_v51 }
 0x1e7   :  { %1357 = vmatpush1.bf16.msra.mxu0 %v1142_v29  ;;  %v886_v29 = vrot.slane %v2184_v13, %v2129_v42 }
 0x1e8   :  { %1358 = vmatprep.subr.bf16.mxu0 %v1139_v32 }
 0x1eb   :  { %1359 = vmatpush1.bf16.msra.mxu0 %v1138_v34 }
 0x1ec   :  { %1360 = vmatprep.subr.bf16.mxu0 %v1135_v62 }
 0x1ef   :  { %1361 = vmatpush1.bf16.msra.mxu0 %v1134_v40 }
 0x1f0   :  { %1362 = vmatprep.subr.bf16.mxu0 %v1195_v43 }
 0x1f3   :  { %1363 = vmatpush2.bf16.msra.mxu0 %v1194_v45 }
 0x1f4   :  { %1364 = vmatprep.subr.bf16.mxu0 %v1191_v48 }
 0x1f7   :  { %1365 = vmatpush2.bf16.msra.mxu0 %v1190_v50 }
 0x1f8   :  { %1366 = vmatprep.subr.bf16.mxu0 %v1187_v56 }
 0x1fb   :  { %1367 = vmatpush2.bf16.msra.mxu0 %v1186_v58 }
 0x1fc   :  { %1368 = vmatprep.subr.bf16.mxu0 %v1183_v37 }
 0x1ff   :  { %1369 = vmatpush2.bf16.msra.mxu0 %v1182_v39 }
 0x200   :  { %1370 = vmatprep.subr.bf16.mxu0 %v1179_v4 }
 0x203   :  { %v795_v11 = vpop.f32.mrf.mxu0  ;;  %1371 = vmatpush2.bf16.msra.mxu0 %v1178_v6 }
 0x204   :  { %v838_v12 = vpop.f32.mrf.mxu1  ;;  %v796_v15 = vadd.f32 %v795_v11, %v753_v9  ;;  %1372 = vmatprep.subr.bf16.mxu0 %v1175_v8 }
 0x205   :  { %v797_v18 = vpop.f32.mrf.mxu0 }
 0x206   :  { %v840_v19 = vpop.f32.mrf.mxu1  ;;  %v839_v22 = vadd.f32 %v838_v12, %v796_v15  ;;  %v798_v23 = vadd.f32 %v797_v18, %v755_v14 }
 0x207   :  { %v799_v25 = vpop.f32.mrf.mxu0  ;;  %1373 = vmatpush2.bf16.msra.mxu0 %v1174_v41 }
 0x208   :  { %v865_v27 = vmul.f32 %v858_v16, %v839_v22  ;;  %v841_v28 = vadd.f32 %v840_v19, %v798_v23  ;;  %v800_v51 = vadd.f32 %v799_v25, %v757_v21  ;;  %v842_v52 = vpop.f32.mrf.mxu1  ;;  %1374 = vmatprep.subr.bf16.mxu0 %v1171_v20 }
 0x209   :  { %v801_v32 = vpop.f32.mrf.mxu0 }
 0x20a   :  { %v889_v34 = vadd.f32 %v882_v46, %v865_v27  ;;  %v866_v62 = vmul.f32 %v862_v24, %v841_v28  ;;  %v843_v63 = vadd.f32 %v842_v52, %v800_v51  ;;  %v802_v40 = vadd.f32 %v801_v32, %v759_v26  ;;  %v844_v35 = vpop.f32.mrf.mxu1 }
 0x20b   :  { %1375 = vmatpush2.bf16.msra.mxu0 %v1170_v30 }
 0x20c   :  { %v869_v43 = vmul.f32 %v858_v16, %v843_v63  ;;  %v890_v45 = vadd.f32 %v886_v29, %v866_v62  ;;  %v845_v48 = vadd.f32 %v844_v35, %v802_v40  ;;  %1376 = vmatprep.subr.bf16.mxu0 %v1167_v33  ;;  %v905_v49 = vmul.f32 0.2, %v889_v34 }
 0x20d   :  { %vm897_vm4 = vcmp.gt.f32.partialorder %v889_v34, 0.0  ;;  %v1027_v35 = vrot.slane %v2182_v59, %v2158_v47 }
 0x20e   :  { %v893_v50 = vadd.f32 %v882_v46, %v869_v43  ;;  %v870_v54 = vmul.f32 %v862_v24, %v845_v48  ;;  %v906_v56 = vmul.f32 0.2, %v890_v45  ;;  %v913_v58 = vsel %vm897_vm4, %v889_v34, %v905_v49 }
 0x20f   :  { %1377 = vmatpush2.bf16.msra.mxu0 %v1166_v44  ;;  %vm898_vm6 = vcmp.gt.f32.partialorder %v890_v45, 0.0  ;;  %v1031_v49 = vrot.slane %v2184_v13, %v2158_v47 }
 0x210   :  { %vm901_vm5 = vcmp.gt.f32.partialorder %v893_v50, 0.0  ;;  %v909_v55 = vmul.f32 0.2, %v893_v50  ;;  %v894_v57 = vadd.f32 %v886_v29, %v870_v54  ;;  %v914_v0 = vsel %vm898_vm6, %v890_v45, %v906_v56 }
 0x211   :  { %v1051_v56 = vrot.slane %v2182_v59, %v2161_v53 }
 0x212   :  { %v917_v61 = vsel %vm901_vm5, %v893_v50, %v909_v55  ;;  %vm902_vm7 = vcmp.gt.f32.partialorder %v894_v57, 0.0  ;;  %v910_v37 = vmul.f32 0.2, %v894_v57  ;;  %1379 = vmatmul.mubr.bf16.vlgmr.msra.gmra.mxu0 %v2177_v38 }
 0x213   :  { %v933_v36 = vadd.f32 %v917_v61, %v913_v58 }
 0x214   :  { %v918_v2 = vsel %vm902_vm7, %v894_v57, %v910_v37 }
 0x215   :  { %v934_v39 = vrot.slane %v933_v36, 4  ;;  %v940_v3 = vadd.f32 %v918_v2, %v914_v0 }
 0x217   :  { %v935_v4 = vadd.f32 %v934_v39, %v933_v36  ;;  %v941_v5 = vrot.slane %v940_v3, 4 }
 0x219   :  { %v936_v6 = vrot.slane %v935_v4, 2  ;;  %v942_v7 = vadd.f32 %v941_v5, %v940_v3 }
 0x21b   :  { %v937_v60 = vadd.f32 %v936_v6, %v935_v4  ;;  %v943_v8 = vrot.slane %v942_v7, 2 }
 0x21d   :  { %v938_v9 = vrot.slane %v937_v60, 1  ;;  %v944_v10 = vadd.f32 %v943_v8, %v942_v7  ;;  %v1111_v8 = vld [vmem:[#allocation7 + $0x158] sm:$0xff] }
 0x21f   :  { %v939_v11 = vadd.f32 %v938_v9, %v937_v60  ;;  %v945_v12 = vrot.slane %v944_v10, 1  ;;  %v1223_v60 = vunpack.c.l.s8.bf16 %v2175_v1  ;;  %v1219_v9 = vunpack.c.h.s8.bf16 %v1111_v8  ;;  %v1106_v1 = vld [vmem:[#allocation7 + $0x130] sm:$0xff] }
 0x221   :  { %v950_v14 = vmul.f32 0.0625, %v939_v11  ;;  %v946_v15 = vadd.f32 %v945_v12, %v944_v10  ;;  %v1110_v10 = vld [vmem:[#allocation7 + $0x150] sm:$0xff]  ;;  %v1215_v12 = vunpack.c.l.s8.bf16 %v1111_v8 }
 0x222   :  { %v1218_v11 = vunpack.c.h.s8.bf16 %v1110_v10 }
 0x223   :  { %v954_v16 = vsub.f32 %v913_v58, %v950_v14  ;;  %v958_v41 = vsub.f32 %v917_v61, %v950_v14  ;;  %v951_v17 = vmul.f32 0.0625, %v946_v15  ;;  %v1055_v61 = vrot.slane %v2184_v13, %v2161_v53  ;;  %v1107_v14 = vld [vmem:[#allocation7 + $0x138] sm:$0xff] }
 0x224   :  { %v1214_v15 = vunpack.c.l.s8.bf16 %v1110_v10 }
 0x225   :  { %v962_v38 = vmul.f32 %v954_v16, %v954_v16  ;;  %v966_v46 = vmul.f32 %v958_v41, %v958_v41  ;;  %v959_v18 = vsub.f32 %v918_v2, %v951_v17  ;;  %v955_v19 = vsub.f32 %v914_v0, %v951_v17  ;;  %v1114_v2 = vld [vmem:[#allocation7 + $0x170] sm:$0xff] }
 0x226   :  { %v1226_v6 = vunpack.c.h.s8.bf16 %v1114_v2  ;;  %v1222_v53 = vunpack.c.l.s8.bf16 %v1114_v2  ;;  %v1207_v17 = vunpack.c.l.s8.bf16 %v1107_v14 }
 0x227   :  { %v982_v20 = vadd.f32 %v966_v46, %v962_v38  ;;  %v967_v21 = vmul.f32 %v959_v18, %v959_v18  ;;  %v963_v22 = vmul.f32 %v955_v19, %v955_v19  ;;  %v1103_v38 = vld [vmem:[#allocation7 + $0x118] sm:$0xff]  ;;  %v1206_v46 = vunpack.c.l.s8.bf16 %v1106_v1 }
 0x229   :  { %v983_v23 = vrot.slane %v982_v20, 4  ;;  %v989_v24 = vadd.f32 %v967_v21, %v963_v22  ;;  %v1199_v21 = vunpack.c.l.s8.bf16 %v1103_v38  ;;  %v1131_v22 = vld [vmem:[#allocation7 + $0x1f8] sm:$0xff] }
 0x22b   :  { %v984_v25 = vadd.f32 %v983_v23, %v982_v20  ;;  %v990_v30 = vrot.slane %v989_v24, 4 }
 0x22d   :  { %v985_v26 = vrot.slane %v984_v25, 2  ;;  %v991_v27 = vadd.f32 %v990_v30, %v989_v24  ;;  %v1259_v24 = vunpack.c.h.s8.bf16 %v1131_v22 }
 0x22f   :  { %v986_v28 = vadd.f32 %v985_v26, %v984_v25  ;;  %v992_v51 = vrot.slane %v991_v27, 2  ;;  %v1130_v25 = vld [vmem:[#allocation7 + $0x1f0] sm:$0xff]  ;;  %v1255_v26 = vunpack.c.l.s8.bf16 %v1131_v22 }
 0x230   :  { %v1258_v30 = vunpack.c.h.s8.bf16 %v1130_v25 }
 0x231   :  { %v987_v52 = vrot.slane %v986_v28, 1  ;;  %v993_v29 = vadd.f32 %v992_v51, %v991_v27  ;;  %v1127_v27 = vld [vmem:[#allocation7 + $0x1d8] sm:$0xff] }
 0x232   :  { %v1251_v51 = vunpack.c.h.s8.bf16 %v1127_v27 }
 0x233   :  { %v988_v32 = vadd.f32 %v987_v52, %v986_v28  ;;  %v994_v33 = vrot.slane %v993_v29, 1  ;;  %v1254_v28 = vunpack.c.l.s8.bf16 %v1130_v25  ;;  %v1126_v52 = vld [vmem:[#allocation7 + $0x1d0] sm:$0xff]  ;;  %v2209_v25 = vsub.s32 7, %v2120_v31 }
 0x235   :  { %v998_v34 = vmul.f32 0.0625, %v988_v32  ;;  %v995_v62 = vadd.f32 %v994_v33, %v993_v29  ;;  %v1250_v29 = vunpack.c.h.s8.bf16 %v1126_v52  ;;  %v1247_v32 = vunpack.c.l.s8.bf16 %v1127_v27  ;;  %v1123_v33 = vld [vmem:[#allocation7 + $0x1b8] sm:$0xff]  ;;  %v1661_v27 = vld [vmem:[#allocation8 + $0x48] sm:$0xff] }
 0x237   :  { %v1002_v63 = vadd.f32 0.8, %v998_v34  ;;  %v999_v40 = vmul.f32 0.0625, %v995_v62  ;;  %v1246_v34 = vunpack.c.l.s8.bf16 %v1126_v52  ;;  %v1243_v62 = vunpack.c.h.s8.bf16 %v1123_v33 }
 0x239   :  { %1875 = vrsqrt.f32 %v1002_v63  ;;  %v1003_v43 = vadd.f32 0.8, %v999_v40  ;;  %v1122_v63 = vld [vmem:[#allocation7 + $0x1b0] sm:$0xff] }
 0x23a   :  { %v1242_v40 = vunpack.c.h.s8.bf16 %v1122_v63 }
 0x23b   :  { %1877 = vrsqrt.f32 %v1003_v43  ;;  %v1239_v43 = vunpack.c.l.s8.bf16 %v1123_v33 }
 0x246   :  { %v1876_v44 = vpop.eup %1875 }
 0x247   :  { %v1014_v45 = vmul.f32 %v1876_v44, %v958_v41  ;;  %v1010_v48 = vmul.f32 %v1876_v44, %v954_v16  ;;  %v1211_v16 = vunpack.c.h.s8.bf16 %v1107_v14  ;;  %v1210_v41 = vunpack.c.h.s8.bf16 %v1106_v1 }
 0x248   :  { %v1878_v50 = vpop.eup %1877  ;;  %v1238_v44 = vunpack.c.l.s8.bf16 %v1122_v63 }
 0x249   :  { %v1034_v54 = vmul.f32 %v1027_v35, %v1010_v48  ;;  %v1038_v55 = vmul.f32 %v1027_v35, %v1014_v45  ;;  %v1011_v57 = vmul.f32 %v1878_v50, %v955_v19  ;;  %v1015_v58 = vmul.f32 %v1878_v50, %v959_v18  ;;  %v1102_v19 = vld [vmem:[#allocation7 + $0x110] sm:$0xff]  ;;  %v1119_v35 = vld [vmem:[#allocation7 + $0x198] sm:$0xff] }
 0x24a   :  { %v1203_v18 = vunpack.c.h.s8.bf16 %v1103_v38  ;;  %v1202_v20 = vunpack.c.h.s8.bf16 %v1102_v19  ;;  %v1198_v23 = vunpack.c.l.s8.bf16 %v1102_v19  ;;  %v1235_v45 = vunpack.c.h.s8.bf16 %v1119_v35  ;;  %v1118_v48 = vld [vmem:[#allocation7 + $0x190] sm:$0xff] }
 0x24b   :  { %v1035_v36 = vmul.f32 %v1031_v49, %v1011_v57  ;;  %v1039_v37 = vmul.f32 %v1031_v49, %v1015_v58  ;;  %v1058_v0 = vadd.f32 %v1051_v56, %v1034_v54  ;;  %v1062_v39 = vadd.f32 %v1051_v56, %v1038_v55  ;;  %v1659_v55 = vld [vmem:[#allocation8 + $0x38] sm:$0xff] }
 0x24c   :  { %v1234_v49 = vunpack.c.h.s8.bf16 %v1118_v48  ;;  %v1231_v50 = vunpack.c.l.s8.bf16 %v1119_v35  ;;  %v1230_v54 = vunpack.c.l.s8.bf16 %v1118_v48  ;;  %v1683_v56 = vunpack.c.h.s8.bf16 %v1659_v55  ;;  %v1655_v57 = vld [vmem:[#allocation8 + $0x18] sm:$0xff]  ;;  %v1660_v48 = vld [vmem:[#allocation8 + $0x40] sm:$0xff] }
 0x24d   :  { %v1059_v3 = vadd.f32 %v1055_v61, %v1035_v36  ;;  %v1063_v4 = vadd.f32 %v1055_v61, %v1039_v37  ;;  %v2203_v7 = vpack.c.bf16 %v1062_v39, %v1058_v0  ;;  %v1675_v58 = vunpack.c.h.s8.bf16 %v1655_v57  ;;  %v1658_v37 = vld [vmem:[#allocation8 + $0x30] sm:$0xff] }
 0x24e   :  { %1815 = vmatprep.subr.bf16.mxu0 %v1683_v56  ;;  %v1682_v61 = vunpack.c.l.s8.bf16 %v1659_v55  ;;  %v1674_v36 = vunpack.c.l.s8.bf16 %v1655_v57  ;;  %v1681_v0 = vunpack.c.h.s8.bf16 %v1658_v37  ;;  %v1654_v39 = vld [vmem:[#allocation8 + $0x10] sm:$0xff]  ;;  %v1686_v35 = vunpack.c.l.s8.bf16 %v1661_v27 }
 0x24f   :  { %v1067_v5 = vpack.c.bf16 %v1063_v4, %v1059_v3  ;;  %1816 = vmatpush3.bf16.msra.mxu0 %v1675_v58  ;;  %v1673_v2 = vunpack.c.h.s8.bf16 %v1654_v39  ;;  %v1680_v3 = vunpack.c.l.s8.bf16 %v1658_v37  ;;  %v1672_v4 = vunpack.c.l.s8.bf16 %v1654_v39 }
 0x250   :  { %1817 = vmatprep.subr.bf16.mxu0 %v1682_v61  ;;  %v1685_v56 = vunpack.c.h.s8.bf16 %v1660_v48 }
 0x251   :  { %1335 = vmatprep.mubr.bf16.mxu1 %v1067_v5 }
 0x252   :  { %1336 = vmatmul.mubr.bf16.vlgmr.msra.gmra.mxu1 %v2203_v7 }
 0x253   :  { %1390 = vmatpush1.bf16.msra.mxu1 %v1226_v6  ;;  %1421 = vmatprep.mubr.bf16.mxu1 %v1067_v5  ;;  %v1657_v5 = vld [vmem:[#allocation8 + $0x28] sm:$0xff] }
 0x254   :  { %1391 = vmatprep.subr.bf16.mxu1 %v1223_v60  ;;  %1818 = vmatpush3.bf16.msra.mxu0 %v1674_v36  ;;  %v1679_v6 = vunpack.c.h.s8.bf16 %v1657_v5  ;;  %v1678_v8 = vunpack.c.l.s8.bf16 %v1657_v5 }
 0x255   :  { %1819 = vmatprep.subr.bf16.mxu0 %v1681_v0 }
 0x257   :  { %1392 = vmatpush1.bf16.msra.mxu1 %v1222_v53 }
 0x258   :  { %1393 = vmatprep.subr.bf16.mxu1 %v1219_v9  ;;  %1820 = vmatpush3.bf16.msra.mxu0 %v1673_v2  ;;  %v1656_v9 = vld [vmem:[#allocation8 + $0x20] sm:$0xff] }
 0x259   :  { %1821 = vmatprep.subr.bf16.mxu0 %v1680_v3  ;;  %v1677_v10 = vunpack.c.h.s8.bf16 %v1656_v9  ;;  %v1676_v14 = vunpack.c.l.s8.bf16 %v1656_v9 }
 0x25b   :  { %1394 = vmatpush1.bf16.msra.mxu1 %v1218_v11  ;;  %v1652_v11 = vld [vmem:[#allocation8] sm:$0xff] }
 0x25c   :  { %1395 = vmatprep.subr.bf16.mxu1 %v1215_v12  ;;  %1822 = vmatpush3.bf16.msra.mxu0 %v1672_v4  ;;  %v1669_v12 = vunpack.c.h.s8.bf16 %v1652_v11  ;;  %v1684_v4 = vunpack.c.l.s8.bf16 %v1660_v48 }
 0x25d   :  { %1823 = vmatprep.subr.bf16.mxu0 %v1679_v6 }
 0x25f   :  { %1396 = vmatpush1.bf16.msra.mxu1 %v1214_v15  ;;  %v1668_v15 = vunpack.c.l.s8.bf16 %v1652_v11 }
 0x260   :  { %1397 = vmatprep.subr.bf16.mxu1 %v1211_v16  ;;  %v1667_v16 = vld [vmem:[#allocation8 + $0x78] sm:$0xff] }
 0x261   :  { %v1699_v1 = vunpack.c.h.s8.bf16 %v1667_v16  ;;  %v1698_v38 = vunpack.c.l.s8.bf16 %v1667_v16 }
 0x263   :  { %1398 = vmatpush1.bf16.msra.mxu1 %v1210_v41  ;;  %v1663_v41 = vld [vmem:[#allocation8 + $0x58] sm:$0xff] }
 0x264   :  { %1399 = vmatprep.subr.bf16.mxu1 %v1207_v17  ;;  %v1691_v17 = vunpack.c.h.s8.bf16 %v1663_v41 }
 0x267   :  { %1400 = vmatpush1.bf16.msra.mxu1 %v1206_v46  ;;  %v1690_v46 = vunpack.c.l.s8.bf16 %v1663_v41 }
 0x268   :  { %1401 = vmatprep.subr.bf16.mxu1 %v1203_v18  ;;  %v1666_v18 = vld [vmem:[#allocation8 + $0x70] sm:$0xff] }
 0x269   :  { %v1697_v19 = vunpack.c.h.s8.bf16 %v1666_v18  ;;  %v1696_v22 = vunpack.c.l.s8.bf16 %v1666_v18 }
 0x26b   :  { %1402 = vmatpush1.bf16.msra.mxu1 %v1202_v20  ;;  %v1662_v20 = vld [vmem:[#allocation8 + $0x50] sm:$0xff] }
 0x26c   :  { %1403 = vmatprep.subr.bf16.mxu1 %v1199_v21  ;;  %v1689_v21 = vunpack.c.h.s8.bf16 %v1662_v20 }
 0x26f   :  { %1404 = vmatpush1.bf16.msra.mxu1 %v1198_v23  ;;  %v1688_v23 = vunpack.c.l.s8.bf16 %v1662_v20 }
 0x270   :  { %1405 = vmatprep.subr.bf16.mxu1 %v1259_v24 }
 0x273   :  { %1406 = vmatpush2.bf16.msra.mxu1 %v1258_v30  ;;  %v1665_v30 = vld [vmem:[#allocation8 + $0x68] sm:$0xff] }
 0x274   :  { %1407 = vmatprep.subr.bf16.mxu1 %v1255_v26  ;;  %v1695_v26 = vunpack.c.h.s8.bf16 %v1665_v30 }
 0x277   :  { %1408 = vmatpush2.bf16.msra.mxu1 %v1254_v28  ;;  %v2212_v28 = vsub.s32 4, %v2120_v31 }
 0x278   :  { %1409 = vmatprep.subr.bf16.mxu1 %v1251_v51  ;;  %v1687_v51 = vunpack.c.h.s8.bf16 %v1661_v27 }
 0x27b   :  { %1410 = vmatpush2.bf16.msra.mxu1 %v1250_v29  ;;  %v2214_v29 = vld [vmem:[#allocation10] sm:$0xff] }
 0x27c   :  { %1411 = vmatprep.subr.bf16.mxu1 %v1247_v32  ;;  %v1435_v32 = vrot.slane %v2214_v29, %v2209_v25  ;;  %v1459_v63 = vrot.slane %v2214_v29, %v2212_v28 }
 0x27f   :  { %1412 = vmatpush2.bf16.msra.mxu1 %v1246_v34  ;;  %v1694_v34 = vunpack.c.l.s8.bf16 %v1665_v30 }
 0x280   :  { %1413 = vmatprep.subr.bf16.mxu1 %v1243_v62 }
 0x283   :  { %1414 = vmatpush2.bf16.msra.mxu1 %v1242_v40  ;;  %v2220_v40 = vld [vmem:[#allocation10 + $0x8] sm:$0xff] }
 0x284   :  { %1415 = vmatprep.subr.bf16.mxu1 %v1239_v43  ;;  %v1439_v43 = vrot.slane %v2220_v40, %v2209_v25  ;;  %v1463_v57 = vrot.slane %v2220_v40, %v2212_v28 }
 0x287   :  { %1416 = vmatpush2.bf16.msra.mxu1 %v1238_v44 }
 0x288   :  { %1417 = vmatprep.subr.bf16.mxu1 %v1235_v45  ;;  %v1664_v45 = vld [vmem:[#allocation8 + $0x60] sm:$0xff] }
 0x289   :  { %v1693_v55 = vunpack.c.h.s8.bf16 %v1664_v45  ;;  %v1692_v61 = vunpack.c.l.s8.bf16 %v1664_v45 }
 0x28b   :  { %1418 = vmatpush2.bf16.msra.mxu1 %v1234_v49 }
 0x28c   :  { %1419 = vmatprep.subr.bf16.mxu1 %v1231_v50 }
 0x28f   :  { %1420 = vmatpush2.bf16.msra.mxu1 %v1230_v54 }
 0x290   :  { %1837 = vmatprep.subr.bf16.mxu1 %v1699_v1 }
 0x292   :  { %1422 = vmatmul.mubr.bf16.vlgmr.msra.gmra.mxu1 %v2203_v7  ;;  %v1653_v7 = vld [vmem:[#allocation8 + $0x8] sm:$0xff]  ;;  %v1294_v24 = vpop.f32.mrf.mxu0 }
 0x293   :  { %v1671_v60 = vunpack.c.h.s8.bf16 %v1653_v7  ;;  %v1670_v53 = vunpack.c.l.s8.bf16 %v1653_v7  ;;  %1838 = vmatpush3.bf16.msra.mxu1 %v1691_v17 }
 0x294   :  { %1839 = vmatprep.subr.bf16.mxu1 %v1698_v38  ;;  %v1296_v52 = vpop.f32.mrf.mxu0 }
 0x295   :  { %1824 = vmatpush3.bf16.msra.mxu0 %v1671_v60 }
 0x296   :  { %1825 = vmatprep.subr.bf16.mxu0 %v1678_v8  ;;  %v1298_v49 = vpop.f32.mrf.mxu0 }
 0x297   :  { %1840 = vmatpush3.bf16.msra.mxu1 %v1690_v46 }
 0x298   :  { %1841 = vmatprep.subr.bf16.mxu1 %v1697_v19  ;;  %v1300_v2 = vpop.f32.mrf.mxu0 }
 0x299   :  { %1826 = vmatpush3.bf16.msra.mxu0 %v1670_v53 }
 0x29a   :  { %1827 = vmatprep.subr.bf16.mxu0 %v1677_v10 }
 0x29b   :  { %1842 = vmatpush3.bf16.msra.mxu1 %v1689_v21 }
 0x29c   :  { %1843 = vmatprep.subr.bf16.mxu1 %v1696_v22 }
 0x29d   :  { %1828 = vmatpush3.bf16.msra.mxu0 %v1669_v12 }
 0x29e   :  { %1829 = vmatprep.subr.bf16.mxu0 %v1676_v14 }
 0x29f   :  { %1844 = vmatpush3.bf16.msra.mxu1 %v1688_v23 }
 0x2a0   :  { %1845 = vmatprep.subr.bf16.mxu1 %v1695_v26 }
 0x2a1   :  { %1830 = vmatpush3.bf16.msra.mxu0 %v1668_v15 }
 0x2a3   :  { %1846 = vmatpush3.bf16.msra.mxu1 %v1687_v51 }
 0x2a4   :  { %1847 = vmatprep.subr.bf16.mxu1 %v1694_v34 }
 0x2a7   :  { %1848 = vmatpush3.bf16.msra.mxu1 %v1686_v35 }
 0x2a8   :  { %1849 = vmatprep.subr.bf16.mxu1 %v1693_v55 }
 0x2ab   :  { %1850 = vmatpush3.bf16.msra.mxu1 %v1685_v56 }
 0x2ac   :  { %1851 = vmatprep.subr.bf16.mxu1 %v1692_v61 }
 0x2af   :  { %1852 = vmatpush3.bf16.msra.mxu1 %v1684_v4 }
 0x312   :  { %v1337_v33 = vpop.f32.mrf.mxu1 }
 0x313   :  { %v1338_v62 = vadd.f32 %v1337_v33, %v1294_v24 }
 0x314   :  { %v1339_v44 = vpop.f32.mrf.mxu1 }
 0x315   :  { %v1448_v50 = vmul.f32 %v1435_v32, %v1338_v62  ;;  %v1340_v54 = vadd.f32 %v1339_v44, %v1296_v52 }
 0x316   :  { %v1341_v58 = vpop.f32.mrf.mxu1 }
 0x317   :  { %v1472_v36 = vadd.f32 %v1459_v63, %v1448_v50  ;;  %v1449_v37 = vmul.f32 %v1439_v43, %v1340_v54  ;;  %v1342_v0 = vadd.f32 %v1341_v58, %v1298_v49 }
 0x318   :  { %v1343_v39 = vpop.f32.mrf.mxu1 }
 0x319   :  { %v1452_v3 = vmul.f32 %v1435_v32, %v1342_v0  ;;  %v1473_v5 = vadd.f32 %v1463_v57, %v1449_v37  ;;  %v1344_v6 = vadd.f32 %v1343_v39, %v1300_v2  ;;  %v1488_v7 = vmul.f32 0.2, %v1472_v36 }
 0x31a   :  { %vm1480_vm8 = vcmp.gt.f32.partialorder %v1472_v36, 0.0 }
 0x31b   :  { %v1476_v60 = vadd.f32 %v1459_v63, %v1452_v3  ;;  %v1453_v8 = vmul.f32 %v1439_v43, %v1344_v6  ;;  %v1489_v9 = vmul.f32 0.2, %v1473_v5  ;;  %v1496_v11 = vsel %vm1480_vm8, %v1472_v36, %v1488_v7 }
 0x31c   :  { %vm1481_vm10 = vcmp.gt.f32.partialorder %v1473_v5, 0.0  ;;  %v2227_v6 = vsub.s32 5, %v2120_v31 }
 0x31d   :  { %vm1484_vm9 = vcmp.gt.f32.partialorder %v1476_v60, 0.0  ;;  %v1492_v53 = vmul.f32 0.2, %v1476_v60  ;;  %v1477_v10 = vadd.f32 %v1463_v57, %v1453_v8  ;;  %v1497_v16 = vsel %vm1481_vm10, %v1473_v5, %v1489_v9  ;;  %v1380_v5 = vpop.f32.mrf.mxu0 }
 0x31e   :  { %v1603_v9 = vrot.slane %v2214_v29, %v2227_v6 }
 0x31f   :  { %v1500_v12 = vsel %vm1484_vm9, %v1476_v60, %v1492_v53  ;;  %vm1485_vm11 = vcmp.gt.f32.partialorder %v1477_v10, 0.0  ;;  %v1493_v15 = vmul.f32 0.2, %v1477_v10  ;;  %v1382_v7 = vpop.f32.mrf.mxu0  ;;  %v1443_v60 = vrot.slane %v2182_v59, %v2209_v25 }
 0x320   :  { %v1504_v14 = vadd.f32 %v1500_v12, %v1496_v11  ;;  %v2232_v53 = vsub.s32 6, %v2120_v31  ;;  %v1471_v31 = vrot.slane %v2184_v13, %v2212_v28 }
 0x321   :  { %v1501_v41 = vsel %vm1485_vm11, %v1477_v10, %v1493_v15 }
 0x322   :  { %v1505_v1 = vrot.slane %v1504_v14, 4  ;;  %v1511_v17 = vadd.f32 %v1501_v41, %v1497_v16 }
 0x324   :  { %v1506_v38 = vadd.f32 %v1505_v1, %v1504_v14  ;;  %v1512_v46 = vrot.slane %v1511_v17, 4  ;;  %v1447_v14 = vrot.slane %v2184_v13, %v2209_v25 }
 0x326   :  { %v1507_v18 = vrot.slane %v1506_v38, 2  ;;  %v1513_v19 = vadd.f32 %v1512_v46, %v1511_v17 }
 0x328   :  { %v1508_v20 = vadd.f32 %v1507_v18, %v1506_v38  ;;  %v1514_v21 = vrot.slane %v1513_v19, 2 }
 0x32a   :  { %v1509_v22 = vrot.slane %v1508_v20, 1  ;;  %v1515_v23 = vadd.f32 %v1514_v21, %v1513_v19  ;;  %v1607_v19 = vrot.slane %v2220_v40, %v2227_v6 }
 0x32c   :  { %v1510_v24 = vadd.f32 %v1509_v22, %v1508_v20  ;;  %v1516_v30 = vrot.slane %v1515_v23, 1  ;;  %v1627_v22 = vrot.slane %v2214_v29, %v2232_v53 }
 0x32e   :  { %v1532_v26 = vmul.f32 0.0625, %v1510_v24  ;;  %v1517_v27 = vadd.f32 %v1516_v30, %v1515_v23 }
 0x330   :  { %v1536_v51 = vsub.f32 %v1496_v11, %v1532_v26  ;;  %v1540_v52 = vsub.f32 %v1500_v12, %v1532_v26  ;;  %v1533_v32 = vmul.f32 0.0625, %v1517_v27  ;;  %v1467_v12 = vrot.slane %v2182_v59, %v2212_v28 }
 0x332   :  { %v1544_v33 = vmul.f32 %v1536_v51, %v1536_v51  ;;  %v1548_v34 = vmul.f32 %v1540_v52, %v1540_v52  ;;  %v1541_v62 = vsub.f32 %v1501_v41, %v1533_v32  ;;  %v1537_v63 = vsub.f32 %v1497_v16, %v1533_v32  ;;  %v1384_v41 = vpop.f32.mrf.mxu0 }
 0x334   :  { %v1552_v43 = vadd.f32 %v1548_v34, %v1544_v33  ;;  %v1549_v35 = vmul.f32 %v1541_v62, %v1541_v62  ;;  %v1545_v44 = vmul.f32 %v1537_v63, %v1537_v63  ;;  %v1386_v28 = vpop.f32.mrf.mxu0 }
 0x336   :  { %v1553_v45 = vrot.slane %v1552_v43, 4  ;;  %v1559_v48 = vadd.f32 %v1549_v35, %v1545_v44 }
 0x338   :  { %v1554_v49 = vadd.f32 %v1553_v45, %v1552_v43  ;;  %v1560_v50 = vrot.slane %v1559_v48, 4 }
 0x33a   :  { %v1555_v54 = vrot.slane %v1554_v49, 2  ;;  %v1561_v55 = vadd.f32 %v1560_v50, %v1559_v48 }
 0x33c   :  { %v1556_v56 = vadd.f32 %v1555_v54, %v1554_v49  ;;  %v1562_v57 = vrot.slane %v1561_v55, 2 }
 0x33e   :  { %v1557_v58 = vrot.slane %v1556_v56, 1  ;;  %v1563_v61 = vadd.f32 %v1562_v57, %v1561_v55 }
 0x340   :  { %v1558_v36 = vadd.f32 %v1557_v58, %v1556_v56  ;;  %v1564_v37 = vrot.slane %v1563_v61, 1 }
 0x342   :  { %v1580_v0 = vmul.f32 0.0625, %v1558_v36  ;;  %v1565_v39 = vadd.f32 %v1564_v37, %v1563_v61 }
 0x344   :  { %v1584_v2 = vadd.f32 0.8, %v1580_v0  ;;  %v1581_v3 = vmul.f32 0.0625, %v1565_v39 }
 0x346   :  { %1879 = vrsqrt.f32 %v1584_v2  ;;  %v1585_v4 = vadd.f32 0.8, %v1581_v3 }
 0x348   :  { %1881 = vrsqrt.f32 %v1585_v4 }
 0x352   :  { %v1423_v8 = vpop.f32.mrf.mxu1 }
 0x353   :  { %v1880_v10 = vpop.eup %1879  ;;  %v1424_v11 = vadd.f32 %v1423_v8, %v1380_v5 }
 0x354   :  { %v1596_v15 = vmul.f32 %v1880_v10, %v1540_v52  ;;  %v1425_v16 = vpop.f32.mrf.mxu1  ;;  %v1592_v1 = vmul.f32 %v1880_v10, %v1536_v51  ;;  %v1631_v51 = vrot.slane %v2220_v40, %v2232_v53 }
 0x355   :  { %v1450_v17 = vmul.f32 %v1443_v60, %v1424_v11  ;;  %v1426_v38 = vadd.f32 %v1425_v16, %v1382_v7  ;;  %v1882_v46 = vpop.eup %1881 }
 0x356   :  { %v1427_v18 = vpop.f32.mrf.mxu1  ;;  %v1616_v20 = vmul.f32 %v1603_v9, %v1592_v1  ;;  %v1620_v21 = vmul.f32 %v1603_v9, %v1596_v15  ;;  %v1593_v30 = vmul.f32 %v1882_v46, %v1537_v63  ;;  %v1597_v27 = vmul.f32 %v1882_v46, %v1541_v62 }
 0x357   :  { %v1474_v25 = vadd.f32 %v1467_v12, %v1450_v17  ;;  %v1451_v23 = vmul.f32 %v1447_v14, %v1426_v38  ;;  %v1428_v24 = vadd.f32 %v1427_v18, %v1384_v41 }
 0x358   :  { %v1429_v26 = vpop.f32.mrf.mxu1  ;;  %v1617_v34 = vmul.f32 %v1607_v19, %v1593_v30  ;;  %v1621_v43 = vmul.f32 %v1607_v19, %v1597_v27  ;;  %v1640_v45 = vadd.f32 %v1627_v22, %v1616_v20  ;;  %v1644_v48 = vadd.f32 %v1627_v22, %v1620_v21 }
 0x359   :  { %v1475_v52 = vadd.f32 %v1471_v31, %v1451_v23  ;;  %v1454_v32 = vmul.f32 %v1443_v60, %v1428_v24  ;;  %v1430_v33 = vadd.f32 %v1429_v26, %v1386_v28  ;;  %v1490_v35 = vmul.f32 0.2, %v1474_v25 }
 0x35a   :  { %vm1482_vm12 = vcmp.gt.f32.partialorder %v1474_v25, 0.0  ;;  %v1641_v49 = vadd.f32 %v1631_v51, %v1617_v34  ;;  %v1645_v50 = vadd.f32 %v1631_v51, %v1621_v43  ;;  %v1648_v57 = vpack.c.bf16 %v1644_v48, %v1640_v45 }
 0x35b   :  { %v1478_v44 = vadd.f32 %v1467_v12, %v1454_v32  ;;  %v1455_v29 = vmul.f32 %v1447_v14, %v1430_v33  ;;  %v1491_v62 = vmul.f32 0.2, %v1475_v52  ;;  %v1498_v40 = vsel %vm1482_vm12, %v1474_v25, %v1490_v35 }
 0x35c   :  { %v1649_v55 = vpack.c.bf16 %v1645_v50, %v1641_v49  ;;  %vm1483_vm14 = vcmp.gt.f32.partialorder %v1475_v52, 0.0  ;;  %v1635_v49 = vrot.slane %v2182_v59, %v2232_v53  ;;  %v1615_v50 = vrot.slane %v2184_v13, %v2227_v6 }
 0x35d   :  { %vm1486_vm13 = vcmp.gt.f32.partialorder %v1478_v44, 0.0  ;;  %v1494_v63 = vmul.f32 0.2, %v1478_v44  ;;  %v1479_v54 = vadd.f32 %v1471_v31, %v1455_v29  ;;  %v1499_v36 = vsel %vm1483_vm14, %v1475_v52, %v1491_v62 }
 0x35e   :  { %1732 = vmatprep.mubr.bf16.mxu0 %v1649_v55 }
 0x35f   :  { %v1502_v56 = vsel %vm1486_vm13, %v1478_v44, %v1494_v63  ;;  %vm1487_vm15 = vcmp.gt.f32.partialorder %v1479_v54, 0.0  ;;  %v1495_v61 = vmul.f32 0.2, %v1479_v54  ;;  %1733 = vmatmul.mubr.bf16.vlgmr.msra.gmra.mxu0 %v1648_v57  ;;  %v1611_v44 = vrot.slane %v2182_v59, %v2227_v6 }
 0x360   :  { %v1518_v58 = vadd.f32 %v1502_v56, %v1498_v40 }
 0x361   :  { %v1503_v0 = vsel %vm1487_vm15, %v1479_v54, %v1495_v61 }
 0x362   :  { %v1519_v37 = vrot.slane %v1518_v58, 4  ;;  %v1525_v39 = vadd.f32 %v1503_v0, %v1499_v36 }
 0x364   :  { %v1520_v2 = vadd.f32 %v1519_v37, %v1518_v58  ;;  %v1526_v3 = vrot.slane %v1525_v39, 4 }
 0x366   :  { %v1521_v4 = vrot.slane %v1520_v2, 2  ;;  %v1527_v5 = vadd.f32 %v1526_v3, %v1525_v39 }
 0x368   :  { %v1522_v7 = vadd.f32 %v1521_v4, %v1520_v2  ;;  %v1528_v60 = vrot.slane %v1527_v5, 2 }
 0x36a   :  { %v1523_v8 = vrot.slane %v1522_v7, 1  ;;  %v1529_v9 = vadd.f32 %v1528_v60, %v1527_v5  ;;  %v110_v5 = vld [vmem:[#allocation10 + $0x20] sm:$0xff] }
 0x36c   :  { %v1524_v10 = vadd.f32 %v1523_v8, %v1522_v7  ;;  %v1530_v11 = vrot.slane %v1529_v9, 1 }
 0x36e   :  { %v1534_v12 = vmul.f32 0.0625, %v1524_v10  ;;  %v1531_v14 = vadd.f32 %v1530_v11, %v1529_v9  ;;  %v1791_v11 = vrot.slane %v110_v5, %v2129_v42 }
 0x370   :  { %v1538_v15 = vsub.f32 %v1498_v40, %v1534_v12  ;;  %v1542_v16 = vsub.f32 %v1502_v56, %v1534_v12  ;;  %v1535_v1 = vmul.f32 0.0625, %v1531_v14  ;;  %v1639_v56 = vrot.slane %v2184_v13, %v2232_v53 }
 0x371   :  { %v1785_v13 = vrot.slane %v110_v5, %v2158_v47 }
 0x372   :  { %v1546_v41 = vmul.f32 %v1538_v15, %v1538_v15  ;;  %v1550_v17 = vmul.f32 %v1542_v16, %v1542_v16  ;;  %v1543_v38 = vsub.f32 %v1503_v0, %v1535_v1  ;;  %v1539_v31 = vsub.f32 %v1499_v36, %v1535_v1 }
 0x374   :  { %v1566_v46 = vadd.f32 %v1550_v17, %v1546_v41  ;;  %v1551_v18 = vmul.f32 %v1543_v38, %v1543_v38  ;;  %v1547_v19 = vmul.f32 %v1539_v31, %v1539_v31 }
 0x376   :  { %v1567_v20 = vrot.slane %v1566_v46, 4  ;;  %v1573_v21 = vadd.f32 %v1551_v18, %v1547_v19 }
 0x378   :  { %v1568_v22 = vadd.f32 %v1567_v20, %v1566_v46  ;;  %v1574_v25 = vrot.slane %v1573_v21, 4 }
 0x37a   :  { %v1569_v23 = vrot.slane %v1568_v22, 2  ;;  %v1575_v24 = vadd.f32 %v1574_v25, %v1573_v21 }
 0x37c   :  { %v1570_v30 = vadd.f32 %v1569_v23, %v1568_v22  ;;  %v1576_v26 = vrot.slane %v1575_v24, 2 }
 0x37e   :  { %v1571_v27 = vrot.slane %v1570_v30, 1  ;;  %v1577_v51 = vadd.f32 %v1576_v26, %v1575_v24 }
 0x380   :  { %v1572_v28 = vadd.f32 %v1571_v27, %v1570_v30  ;;  %v1578_v52 = vrot.slane %v1577_v51, 1 }
 0x382   :  { %v1582_v32 = vmul.f32 0.0625, %v1572_v28  ;;  %v1579_v33 = vadd.f32 %v1578_v52, %v1577_v51 }
 0x384   :  { %v1586_v34 = vadd.f32 0.8, %v1582_v32  ;;  %v1583_v43 = vmul.f32 0.0625, %v1579_v33 }
 0x386   :  { %1883 = vrsqrt.f32 %v1586_v34  ;;  %v1587_v35 = vadd.f32 0.8, %v1583_v43 }
 0x388   :  { %1885 = vrsqrt.f32 %v1587_v35 }
 0x393   :  { %v1884_v45 = vpop.eup %1883 }
 0x394   :  { %v1598_v48 = vmul.f32 %v1884_v45, %v1542_v16  ;;  %v1594_v29 = vmul.f32 %v1884_v45, %v1538_v15 }
 0x395   :  { %v1886_v63 = vpop.eup %1885 }
 0x396   :  { %v1618_v62 = vmul.f32 %v1611_v44, %v1594_v29  ;;  %v1622_v54 = vmul.f32 %v1611_v44, %v1598_v48  ;;  %v1595_v55 = vmul.f32 %v1886_v63, %v1539_v31  ;;  %v1599_v40 = vmul.f32 %v1886_v63, %v1543_v38 }
 0x398   :  { %v1642_v57 = vadd.f32 %v1635_v49, %v1618_v62  ;;  %v1646_v58 = vadd.f32 %v1635_v49, %v1622_v54  ;;  %v1619_v61 = vmul.f32 %v1615_v50, %v1595_v55  ;;  %v1623_v36 = vmul.f32 %v1615_v50, %v1599_v40 }
 0x39a   :  { %v1650_v37 = vpack.c.bf16 %v1646_v58, %v1642_v57  ;;  %v1643_v0 = vadd.f32 %v1639_v56, %v1619_v61  ;;  %v1647_v39 = vadd.f32 %v1639_v56, %v1623_v36 }
 0x39c   :  { %v1651_v2 = vpack.c.bf16 %v1647_v39, %v1643_v0 }
 0x39e   :  { %1773 = vmatprep.mubr.bf16.mxu1 %v1651_v2 }
 0x39f   :  { %1774 = vmatmul.mubr.bf16.vlgmr.msra.gmra.mxu1 %v1650_v37 }
 0x41f   :  { %v1831_v59 = vpop.f32.mrf.mxu0 }
 0x421   :  { %v1832_v6 = vpop.f32.mrf.mxu0 }
 0x422   :  { %v1833_v60 = vadd.f32 %v1832_v6, %v1831_v59 }
 0x423   :  { %v1834_v3 = vpop.f32.mrf.mxu0 }
 0x425   :  { %v1835_v53 = vpop.f32.mrf.mxu0 }
 0x426   :  { %v1836_v14 = vadd.f32 %v1835_v53, %v1834_v3 }
 0x45f   :  { %v1853_v4 = vpop.f32.mrf.mxu1 }
 0x461   :  { %v1854_v7 = vpop.f32.mrf.mxu1 }
 0x462   :  { %v1855_v8 = vadd.f32 %v1854_v7, %v1853_v4 }
 0x463   :  { %v1856_v9 = vpop.f32.mrf.mxu1 }
 0x464   :  { %v1776_v10 = vadd.f32 %v1855_v8, %v1833_v60 }
 0x465   :  { %v1857_v12 = vpop.f32.mrf.mxu1 }
 0x466   :  { %v1786_v15 = vmul.f32 %v1785_v13, %v1776_v10  ;;  %v1858_v16 = vadd.f32 %v1857_v12, %v1856_v9 }
 0x468   :  { %v1779_v1 = vadd.f32 %v1858_v16, %v1836_v14  ;;  %v1792_v41 = vadd.f32 %v1791_v11, %v1786_v15 }
 0x46a   :  { %v1787_v17 = vmul.f32 %v1785_v13, %v1779_v1  ;;  %1794 = vst [vmem:[#allocation11] sm:$0xff] %v1792_v41 }
 0x46c   :  { %v1793_v38 = vadd.f32 %v1791_v11, %v1787_v17 }
 0x46e   :  { %1795 = vst [vmem:[#allocation11 + $0x8] sm:$0xff] %v1793_v38 }
 0x46f   :  { %2000 = shalt.err (!%p1997_p1)
}
 0x470   :  { %1807 = dma.vmem_to_hbm [thread:$0]  %s1802_s4, 256, %s2269_s5, [#allocation4], %s2021_s28, %s2021_s28, %s2022_s29  }
 0x471   :  { %2015 = dma.done.wait [#allocation4], 256  }
 0x472   :  { %2016 = vsyncadd [#allocation4], 4294967040 }
 0x473   :  { %1811 = vsyncpa [#allocation3], 1 }
 0x474   :  { %1812 = vsyncpa [#allocation6], 1 }
 0x475   :  { %1813 = vsyncpa [#allocation9], 1 }
 0x476   :  { %1814 = vsyncpa [#allocation4], 1 }

</bundles_post_ra>
